<compile_context>
chip_gen: v5e
topology: v5e:2x2
jax: 0.10.0
libtpu: 0.0.40
codegen_flags: <defaults>
</compile_context>

<pallas_src>
import functools
import math

import jax
import jax.numpy as jnp
from jax.experimental import pallas as pl
from jax.experimental.pallas import tpu as pltpu


_PARAM_ORDER = ('ln1_w', 'ln1_b',
                'wq', 'bq', 'wk', 'bk', 'wv', 'bv', 'wo', 'bo',
                'ln2_w', 'ln2_b',
                'w1', 'b1', 'w2', 'b2')

_LN_EPS = 1e-6


def _make_block_kernel(num_heads, head_dim, tq, vis):
    inv_sqrt2 = 1.0 / math.sqrt(2.0)

    def layernorm(v, w, b):
        mu = jnp.mean(v, axis=-1, keepdims=True)
        var = jnp.mean((v - mu) ** 2, axis=-1, keepdims=True)   # biased var (torch LayerNorm)
        return (v - mu) * jax.lax.rsqrt(var + _LN_EPS) * w + b

    def kernel(xfull_ref,
               ln1_w_ref, ln1_b_ref,
               wq_ref, bq_ref, wk_ref, bk_ref, wv_ref, bv_ref, wo_ref, bo_ref,
               ln2_w_ref, ln2_b_ref,
               w1_ref, b1_ref, w2_ref, b2_ref,
               out_ref, *rest):
        if vis:
            attn_w_ref, xn_sc, k_sc, v_sc, ctx_sc = rest
        else:
            attn_w_ref = None
            xn_sc, k_sc, v_sc, ctx_sc = rest

        qi = pl.program_id(1)

        # ---- once per batch element (qi == 0): LayerNorm_0 over the full sequence and
        #      lane-dense full-D K/V projections, cached in VMEM scratch for all tiles.
        #      Correctness of this reuse relies on the query-tile axis being the
        #      innermost sequential ("arbitrary") grid axis with batch as the outer axis.
        @pl.when(qi == 0)
        def _():
            xn_full = layernorm(xfull_ref[0].astype(jnp.float32),
                                ln1_w_ref[0], ln1_b_ref[0])
            xn_bf = xn_full.astype(jnp.bfloat16)
            xn_sc[...] = xn_bf
            k_sc[...] = (jnp.dot(xn_bf, wk_ref[...],
                                 preferred_element_type=jnp.float32)
                         + bk_ref[0]).astype(jnp.bfloat16)
            v_sc[...] = (jnp.dot(xn_bf, wv_ref[...],
                                 preferred_element_type=jnp.float32)
                         + bv_ref[0]).astype(jnp.bfloat16)
            # TODO(synk): for long sequences, hoist this K/V projection into its own
            # pipelined stage so it overlaps with the previous batch element's tiles.

        # ---- this query tile ----
        q_start = pl.multiple_of(qi * tq, tq)
        x_q = xfull_ref[0, pl.ds(q_start, tq), :].astype(jnp.float32)    # residual input
        xn_q = xn_sc[pl.ds(q_start, tq), :]                              # cached LN (bf16)

        # full-D lane-dense Q projection (1/sqrt(head_dim) folded into wq/bq host-side)
        q_all = (jnp.dot(xn_q, wq_ref[...], preferred_element_type=jnp.float32)
                 + bq_ref[0]).astype(jnp.bfloat16)                       # (tq, D)

        # per-head attention; contexts are written into a (tq, D) slab so the output
        # projection below is a single full-depth (tq,D)x(D,D) matmul.
        for h in range(num_heads):
            lo = h * head_dim
            q_h = q_all[:, lo:lo + head_dim]                             # (tq, hd) bf16
            k_h = k_sc[:, lo:lo + head_dim]                              # (S, hd)  bf16
            scores = jax.lax.dot_general(                                # Q @ K^T (no transpose)
                q_h, k_h, (((1,), (1,)), ((), ())),
                preferred_element_type=jnp.float32)                      # (tq, S) f32
            scores = scores - jnp.max(scores, axis=-1, keepdims=True)
            e = jnp.exp(scores)
            denom = jnp.sum(e, axis=-1, keepdims=True)
            if vis:
                probs = e / denom                  # exact: these weights are user-visible
                attn_w_ref[0, h] = probs
            else:
                probs = e * pl.reciprocal(denom, approx=True)            # EUP
            v_h = v_sc[:, lo:lo + head_dim]                              # (S, hd) bf16
            ctx_h = jnp.dot(probs.astype(jnp.bfloat16), v_h,
                            preferred_element_type=jnp.float32)          # (tq, hd)
            ctx_sc[:, lo:lo + head_dim] = ctx_h

        attn_out = jnp.dot(ctx_sc[...].astype(jnp.bfloat16), wo_ref[...],
                           preferred_element_type=jnp.float32)           # (tq, D)
        x1 = attn_out + bo_ref[0] + x_q                                  # residual 1 (f32)

        # ---- MLP ----
        xn2 = layernorm(x1, ln2_w_ref[0], ln2_b_ref[0])
        h1 = jnp.dot(xn2.astype(jnp.bfloat16), w1_ref[...],
                     preferred_element_type=jnp.float32) + b1_ref[0]
        h1 = 0.5 * h1 * (1.0 + jax.lax.erf(h1 * inv_sqrt2))              # exact-erf GELU
        h2 = jnp.dot(h1.astype(jnp.bfloat16), w2_ref[...],
                     preferred_element_type=jnp.float32) + b2_ref[0]

        out_ref[0] = (h2 + x1).astype(out_ref.dtype)                     # residual 2

    return kernel


def prepare_block_params(params, num_heads):
    """Host-side, once-per-model weight re-layout: bf16 for MXU operands, f32 for
    LayerNorm/biases, 1/sqrt(head_dim) folded into the query projection."""
    D = params['wq'].shape[0]
    head_dim = D // num_heads
    scale = 1.0 / math.sqrt(head_dim)
    f32, bf16 = jnp.float32, jnp.bfloat16

    def row(b):
        return jnp.asarray(b).reshape(1, -1).astype(f32)

    return {
        'ln1_w': row(params['ln1_w']), 'ln1_b': row(params['ln1_b']),
        'wq': (jnp.asarray(params['wq']) * scale).astype(bf16), 'bq': row(params['bq']) * scale,
        'wk': jnp.asarray(params['wk']).astype(bf16), 'bk': row(params['bk']),
        'wv': jnp.asarray(params['wv']).astype(bf16), 'bv': row(params['bv']),
        'wo': jnp.asarray(params['wo']).astype(bf16), 'bo': row(params['bo']),
        'ln2_w': row(params['ln2_w']), 'ln2_b': row(params['ln2_b']),
        'w1': jnp.asarray(params['w1']).astype(bf16), 'b1': row(params['b1']),
        'w2': jnp.asarray(params['w2']).astype(bf16), 'b2': row(params['b2']),
    }


def _pick_q_tile(S, q_tile=None, max_tq=256):
    # TODO(synk): for S not a multiple of 8/128 (e.g. TransUNet's 196 patches), pad the
    # sequence host-side to the next multiple of 128 (masking padded keys in the softmax)
    # so the query tiling / vis writeback stay lane-dense; omitted here.
    if q_tile is not None:
        if 0 < q_tile <= S and S % q_tile == 0 and (q_tile % 8 == 0 or q_tile == S):
            return q_tile
        return S
    if S <= max_tq:
        return S
    for cand in range(max_tq, 7, -8):      # multiple of 8 (sublane) that divides S
        if S % cand == 0:
            return cand
    return S


def _vmem_limit_bytes(param_bytes, block_bytes, scratch_bytes):
    try:
        phys = int(getattr(pltpu.get_tpu_info(), 'vmem_capacity_bytes', 128 * 2**20))
    except Exception:
        phys = 128 * 2**20
    cap = (phys * 3) // 4                  # leave headroom for compiler-internal scratch/spill
    est = param_bytes + block_bytes + scratch_bytes
    limit = min(cap, max(32 * 2**20, 2 * est))
    limit = max(limit, est + (4 << 20))    # never below the static estimate
    return int(min(limit, phys))


@functools.partial(jax.jit, static_argnames=('num_heads', 'vis', 'q_tile'))
def block_forward(x, kparams, *, num_heads, vis=True, q_tile=None):
    """Transformer Block forward (eval mode). Returns (out, attn_weights or None),
    like the torch module. `kparams` must come from prepare_block_params."""
    B, S, D = x.shape
    head_dim = D // num_heads
    tq = _pick_q_tile(S, q_tile)
    nq = S // tq

    p_args = [kparams[name] for name in _PARAM_ORDER]

    def param_spec(p):
        return pl.BlockSpec(p.shape, lambda b, qi, _nd=p.ndim: (0,) * _nd)

    # x: full sequence; its block index is constant over the inner (query-tile) axis so it
    # is DMA'd once per batch element; the query tile is sliced from it inside the kernel.
    in_specs = [pl.BlockSpec((1, S, D), lambda b, qi: (b, 0, 0))]
    in_specs += [param_spec(p) for p in p_args]

    out_specs = [pl.BlockSpec((1, tq, D), lambda b, qi: (b, qi, 0))]
    out_shape = [jax.ShapeDtypeStruct((B, S, D), x.dtype)]
    if vis:
        out_specs.append(pl.BlockSpec((1, num_heads, tq, S), lambda b, qi: (b, 0, qi, 0)))
        out_shape.append(jax.ShapeDtypeStruct((B, num_heads, S, S), jnp.float32))

    scratch_shapes = [pltpu.VMEM((S, D), jnp.bfloat16),    # LayerNorm_0(x) full sequence
                      pltpu.VMEM((S, D), jnp.bfloat16),    # K (lane-dense)
                      pltpu.VMEM((S, D), jnp.bfloat16),    # V (lane-dense)
                      pltpu.VMEM((tq, D), jnp.float32)]    # per-tile context slab

    param_bytes = 2 * sum(int(p.size) * p.dtype.itemsize for p in p_args)  # double-buffered
    block_bytes = 2 * (S * D + tq * D) * x.dtype.itemsize
    if vis:
        block_bytes += 2 * num_heads * tq * S * 4
    scratch_bytes = 3 * S * D * 2 + tq * D * 4
    vmem_limit = _vmem_limit_bytes(param_bytes, block_bytes, scratch_bytes)

    kernel = _make_block_kernel(num_heads, head_dim, tq, vis)
    outs = pl.pallas_call(
        kernel,
        out_shape=tuple(out_shape),
        grid_spec=pltpu.PrefetchScalarGridSpec(
            num_scalar_prefetch=0,
            grid=(B, nq),                      # batch outer, query tiles inner
            in_specs=in_specs,
            out_specs=out_specs,
            scratch_shapes=scratch_shapes),
        compiler_params=pltpu.CompilerParams(
            # K/V scratch reuse requires the query-tile axis to stay sequential
            # ("arbitrary") and innermost; batch is safe to shard across cores.
            dimension_semantics=("parallel", "arbitrary"),
            vmem_limit_bytes=vmem_limit),
    )(x, *p_args)

    out = outs[0]
    return (out, outs[1]) if vis else (out, None)


def block_reference(x, p, num_heads):
    """Pure-JAX f32 reference mirroring the PyTorch forward (eval mode)."""
    B, S, D = x.shape
    hd = D // num_heads

    def ln(v, w, b):
        mu = jnp.mean(v, -1, keepdims=True)
        var = jnp.mean((v - mu) ** 2, -1, keepdims=True)
        return (v - mu) / jnp.sqrt(var + 1e-6) * w + b

    h = x
    xn = ln(x, p['ln1_w'][0], p['ln1_b'][0])
    q = xn @ p['wq'] + p['bq'][0]
    k = xn @ p['wk'] + p['bk'][0]
    v = xn @ p['wv'] + p['bv'][0]

    def heads(t):
        return t.reshape(B, S, num_heads, hd).transpose(0, 2, 1, 3)

    qh, kh, vh = heads(q), heads(k), heads(v)
    scores = jnp.einsum('bhqd,bhkd->bhqk', qh, kh) / math.sqrt(hd)
    probs = jax.nn.softmax(scores, axis=-1)
    ctx = jnp.einsum('bhqk,bhkd->bhqd', probs, vh).transpose(0, 2, 1, 3).reshape(B, S, D)
    attn_out = ctx @ p['wo'] + p['bo'][0]
    x1 = attn_out + h

    xn2 = ln(x1, p['ln2_w'][0], p['ln2_b'][0])
    h1 = jax.nn.gelu(xn2 @ p['w1'] + p['b1'][0], approximate=False)
    out = h1 @ p['w2'] + p['b2'][0] + x1
    return out, probs


if __name__ == "__main__":
    # Small config consistent with the module: hidden=32, heads=4, mlp_dim=64, seq=16, batch=2.
    # seq=16 with q_tile=8 exercises the multi-query-tile path (cached xn/K/V scratch reuse).
    B, S, D, H, MLP = 2, 16, 32, 4, 64

    key = jax.random.PRNGKey(0)
    ks = jax.random.split(key, 20)

    def nrm(k, shape, scale):
        return (scale * jax.random.normal(k, shape)).astype(jnp.float32)

    params = {
        'ln1_w': 1.0 + nrm(ks[0], (1, D), 0.05),
        'ln1_b': nrm(ks[1], (1, D), 0.05),
        'ln2_w': 1.0 + nrm(ks[2], (1, D), 0.05),
        'ln2_b': nrm(ks[3], (1, D), 0.05),
        # attention Linear layers, stored as (in, out) so the math is x @ W + b
        'wq': nrm(ks[4], (D, D), 0.05), 'bq': nrm(ks[5], (1, D), 0.01),
        'wk': nrm(ks[6], (D, D), 0.05), 'bk': nrm(ks[7], (1, D), 0.01),
        'wv': nrm(ks[8], (D, D), 0.05), 'bv': nrm(ks[9], (1, D), 0.01),
        'wo': nrm(ks[10], (D, D), 0.05), 'bo': nrm(ks[11], (1, D), 0.01),
        # MLP (xavier-ish weights, std=1e-6 biases as in Mlp._init_weights)
        'w1': nrm(ks[12], (D, MLP), math.sqrt(2.0 / (D + MLP))),
        'b1': nrm(ks[13], (1, MLP), 1e-6),
        'w2': nrm(ks[14], (MLP, D), math.sqrt(2.0 / (D + MLP))),
        'b2': nrm(ks[15], (1, D), 1e-6),
    }

    x = jax.random.normal(ks[16], (B, S, D), jnp.float32)

    ref_out, ref_w = block_reference(x, params, H)

    # Hoisted, once-per-model weight re-layout.
    kparams = prepare_block_params(params, num_heads=H)

    # vis=True with 2 query tiles (exercises xn/K/V scratch reuse across the inner grid axis)
    out, attn_w = block_forward(x, kparams, num_heads=H, vis=True, q_tile=8)
    jax.block_until_ready((out, attn_w))
    assert out.shape == (B, S, D) and attn_w.shape == (B, H, S, S)
    # bf16 MXU operands vs. the f32 reference -> loosened tolerances
    assert jnp.allclose(out, ref_out, atol=5e-2, rtol=5e-2), "output mismatch"
    assert jnp.allclose(attn_w, ref_w, atol=2e-2, rtol=2e-2), "attention weights mismatch"

    # vis=False path: no attention-probability writeback, single query tile
    out2, w_none = block_forward(x, kparams, num_heads=H, vis=False)
    jax.block_until_ready(out2)
    assert w_none is None
    assert jnp.allclose(out2, ref_out, atol=5e-2, rtol=5e-2), "output mismatch (vis=False)"

    print("KERNEL_OK")
</pallas_src>

<mosaic_0001>
module attributes {stable_mosaic.version = 11 : i64} {
  func.func @kernel(%arg0: i32, %arg1: i32, %arg2: memref<1x16x32xf32, #tpu.memory_space<vmem>>, %arg3: memref<1x32xf32, #tpu.memory_space<vmem>>, %arg4: memref<1x32xf32, #tpu.memory_space<vmem>>, %arg5: memref<32x32xbf16, #tpu.memory_space<vmem>>, %arg6: memref<1x32xf32, #tpu.memory_space<vmem>>, %arg7: memref<32x32xbf16, #tpu.memory_space<vmem>>, %arg8: memref<1x32xf32, #tpu.memory_space<vmem>>, %arg9: memref<32x32xbf16, #tpu.memory_space<vmem>>, %arg10: memref<1x32xf32, #tpu.memory_space<vmem>>, %arg11: memref<32x32xbf16, #tpu.memory_space<vmem>>, %arg12: memref<1x32xf32, #tpu.memory_space<vmem>>, %arg13: memref<1x32xf32, #tpu.memory_space<vmem>>, %arg14: memref<1x32xf32, #tpu.memory_space<vmem>>, %arg15: memref<32x64xbf16, #tpu.memory_space<vmem>>, %arg16: memref<1x64xf32, #tpu.memory_space<vmem>>, %arg17: memref<64x32xbf16, #tpu.memory_space<vmem>>, %arg18: memref<1x32xf32, #tpu.memory_space<vmem>>, %arg19: memref<1x8x32xf32, #tpu.memory_space<vmem>>, %arg20: memref<1x4x8x16xf32, #tpu.memory_space<vmem>>, %arg21: memref<16x32xbf16, #tpu.memory_space<vmem>>, %arg22: memref<16x32xbf16, #tpu.memory_space<vmem>>, %arg23: memref<16x32xbf16, #tpu.memory_space<vmem>>, %arg24: memref<8x32xf32, #tpu.memory_space<vmem>>) attributes {dimension_semantics = [#tpu.dimension_semantics<parallel>, #tpu.dimension_semantics<arbitrary>], iteration_bounds = array<i64: 2, 2>, scalar_prefetch = 0 : i64, scratch_operands = 4 : i64, tpu.core_type = #tpu.core_type<tc>, window_params = [{transform_indices = @transform_0, window_bounds = array<i64: 1, 16, 32>}, {pipeline_mode = #tpu.pipeline_mode<synchronous>, transform_indices = @transform_1, window_bounds = array<i64: 1, 32>}, {pipeline_mode = #tpu.pipeline_mode<synchronous>, transform_indices = @transform_2, window_bounds = array<i64: 1, 32>}, {pipeline_mode = #tpu.pipeline_mode<synchronous>, transform_indices = @transform_3, window_bounds = array<i64: 32, 32>}, {pipeline_mode = #tpu.pipeline_mode<synchronous>, transform_indices = @transform_4, window_bounds = array<i64: 1, 32>}, {pipeline_mode = #tpu.pipeline_mode<synchronous>, transform_indices = @transform_5, window_bounds = array<i64: 32, 32>}, {pipeline_mode = #tpu.pipeline_mode<synchronous>, transform_indices = @transform_6, window_bounds = array<i64: 1, 32>}, {pipeline_mode = #tpu.pipeline_mode<synchronous>, transform_indices = @transform_7, window_bounds = array<i64: 32, 32>}, {pipeline_mode = #tpu.pipeline_mode<synchronous>, transform_indices = @transform_8, window_bounds = array<i64: 1, 32>}, {pipeline_mode = #tpu.pipeline_mode<synchronous>, transform_indices = @transform_9, window_bounds = array<i64: 32, 32>}, {pipeline_mode = #tpu.pipeline_mode<synchronous>, transform_indices = @transform_10, window_bounds = array<i64: 1, 32>}, {pipeline_mode = #tpu.pipeline_mode<synchronous>, transform_indices = @transform_11, window_bounds = array<i64: 1, 32>}, {pipeline_mode = #tpu.pipeline_mode<synchronous>, transform_indices = @transform_12, window_bounds = array<i64: 1, 32>}, {pipeline_mode = #tpu.pipeline_mode<synchronous>, transform_indices = @transform_13, window_bounds = array<i64: 32, 64>}, {pipeline_mode = #tpu.pipeline_mode<synchronous>, transform_indices = @transform_14, window_bounds = array<i64: 1, 64>}, {pipeline_mode = #tpu.pipeline_mode<synchronous>, transform_indices = @transform_15, window_bounds = array<i64: 64, 32>}, {pipeline_mode = #tpu.pipeline_mode<synchronous>, transform_indices = @transform_16, window_bounds = array<i64: 1, 32>}, {transform_indices = @transform_17, window_bounds = array<i64: 1, 8, 32>}, {transform_indices = @transform_18, window_bounds = array<i64: 1, 4, 8, 16>}]} {
    %c0_i32 = arith.constant 0 : i32
    %0 = arith.cmpi eq, %arg1, %c0_i32 : i32
    %1 = arith.extui %0 : i1 to i32
    %c0_i32_0 = arith.constant 0 : i32
    %2 = arith.cmpi ne, %1, %c0_i32_0 : i32
    scf.if %2 {
      %c0_89 = arith.constant 0 : index
      %c0_90 = arith.constant 0 : index
      %c0_91 = arith.constant 0 : index
      %160 = vector.load %arg2[%c0_89, %c0_90, %c0_91] : memref<1x16x32xf32, #tpu.memory_space<vmem>>, vector<1x16x32xf32>
      %161 = vector.shape_cast %160 : vector<1x16x32xf32> to vector<16x32xf32>
      %c0_92 = arith.constant 0 : index
      %c0_93 = arith.constant 0 : index
      %162 = vector.load %arg3[%c0_92, %c0_93] : memref<1x32xf32, #tpu.memory_space<vmem>>, vector<1x32xf32>
      %163 = vector.shape_cast %162 : vector<1x32xf32> to vector<32xf32>
      %c0_94 = arith.constant 0 : index
      %c0_95 = arith.constant 0 : index
      %164 = vector.load %arg4[%c0_94, %c0_95] : memref<1x32xf32, #tpu.memory_space<vmem>>, vector<1x32xf32>
      %165 = vector.shape_cast %164 : vector<1x32xf32> to vector<32xf32>
      %cst_96 = arith.constant dense<0.000000e+00> : vector<16xf32>
      %166 = vector.multi_reduction <add>, %161, %cst_96 [1] : vector<16x32xf32> to vector<16xf32>
      %167 = vector.shape_cast %166 : vector<16xf32> to vector<16x1xf32>
      %cst_97 = arith.constant 3.200000e+01 : f32
      %168 = vector.broadcast %cst_97 : f32 to vector<16x1xf32>
      %169 = arith.divf %167, %168 : vector<16x1xf32>
      %170 = vector.broadcast %169 : vector<16x1xf32> to vector<16x32xf32>
      %171 = arith.subf %161, %170 : vector<16x32xf32>
      %172 = arith.mulf %171, %171 : vector<16x32xf32>
      %cst_98 = arith.constant dense<0.000000e+00> : vector<16xf32>
      %173 = vector.multi_reduction <add>, %172, %cst_98 [1] : vector<16x32xf32> to vector<16xf32>
      %174 = vector.shape_cast %173 : vector<16xf32> to vector<16x1xf32>
      %cst_99 = arith.constant 3.200000e+01 : f32
      %175 = vector.broadcast %cst_99 : f32 to vector<16x1xf32>
      %176 = arith.divf %174, %175 : vector<16x1xf32>
      %177 = vector.broadcast %169 : vector<16x1xf32> to vector<16x32xf32>
      %178 = arith.subf %161, %177 : vector<16x32xf32>
      %cst_100 = arith.constant 9.99999997E-7 : f32
      %179 = vector.broadcast %cst_100 : f32 to vector<16x1xf32>
      %180 = arith.addf %176, %179 : vector<16x1xf32>
      %181 = math.rsqrt %180 : vector<16x1xf32>
      %182 = vector.broadcast %181 : vector<16x1xf32> to vector<16x32xf32>
      %183 = arith.mulf %178, %182 : vector<16x32xf32>
      %184 = vector.shape_cast %163 : vector<32xf32> to vector<1x32xf32>
      %185 = vector.broadcast %184 : vector<1x32xf32> to vector<16x32xf32>
      %186 = arith.mulf %183, %185 : vector<16x32xf32>
      %187 = vector.shape_cast %165 : vector<32xf32> to vector<1x32xf32>
      %188 = vector.broadcast %187 : vector<1x32xf32> to vector<16x32xf32>
      %189 = arith.addf %186, %188 : vector<16x32xf32>
      %190 = arith.truncf %189 : vector<16x32xf32> to vector<16x32xbf16>
      %c0_101 = arith.constant 0 : index
      %c0_102 = arith.constant 0 : index
      %191 = vector.load %arg21[%c0_101, %c0_102] : memref<16x32xbf16, #tpu.memory_space<vmem>>, vector<16x32xbf16>
      tpu.vector_store %arg21[%c0_101, %c0_102], %190 {strides = array<i32>} : memref<16x32xbf16, #tpu.memory_space<vmem>>, vector<16x32xbf16>,
      %c0_103 = arith.constant 0 : index
      %c0_104 = arith.constant 0 : index
      %192 = vector.load %arg7[%c0_103, %c0_104] : memref<32x32xbf16, #tpu.memory_space<vmem>>, vector<32x32xbf16>
      %cst_105 = arith.constant dense<0.000000e+00> : vector<16x32xf32>
      %193 = tpu.matmul %190, %192, %cst_105 {dimension_numbers = #tpu.dot_dimension_numbers<[1], [0], [0], [1], [0, 0, 1, 1], [], []>} : vector<16x32xbf16>, vector<32x32xbf16>, vector<16x32xf32> -> vector<16x32xf32>
      %c0_106 = arith.constant 0 : index
      %c0_107 = arith.constant 0 : index
      %194 = vector.load %arg8[%c0_106, %c0_107] : memref<1x32xf32, #tpu.memory_space<vmem>>, vector<1x32xf32>
      %195 = vector.shape_cast %194 : vector<1x32xf32> to vector<32xf32>
      %196 = vector.shape_cast %195 : vector<32xf32> to vector<1x32xf32>
      %197 = vector.broadcast %196 : vector<1x32xf32> to vector<16x32xf32>
      %198 = arith.addf %193, %197 : vector<16x32xf32>
      %199 = arith.truncf %198 : vector<16x32xf32> to vector<16x32xbf16>
      %c0_108 = arith.constant 0 : index
      %c0_109 = arith.constant 0 : index
      %200 = vector.load %arg22[%c0_108, %c0_109] : memref<16x32xbf16, #tpu.memory_space<vmem>>, vector<16x32xbf16>
      tpu.vector_store %arg22[%c0_108, %c0_109], %199 {strides = array<i32>} : memref<16x32xbf16, #tpu.memory_space<vmem>>, vector<16x32xbf16>,
      %c0_110 = arith.constant 0 : index
      %c0_111 = arith.constant 0 : index
      %201 = vector.load %arg9[%c0_110, %c0_111] : memref<32x32xbf16, #tpu.memory_space<vmem>>, vector<32x32xbf16>
      %cst_112 = arith.constant dense<0.000000e+00> : vector<16x32xf32>
      %202 = tpu.matmul %190, %201, %cst_112 {dimension_numbers = #tpu.dot_dimension_numbers<[1], [0], [0], [1], [0, 0, 1, 1], [], []>} : vector<16x32xbf16>, vector<32x32xbf16>, vector<16x32xf32> -> vector<16x32xf32>
      %c0_113 = arith.constant 0 : index
      %c0_114 = arith.constant 0 : index
      %203 = vector.load %arg10[%c0_113, %c0_114] : memref<1x32xf32, #tpu.memory_space<vmem>>, vector<1x32xf32>
      %204 = vector.shape_cast %203 : vector<1x32xf32> to vector<32xf32>
      %205 = vector.shape_cast %204 : vector<32xf32> to vector<1x32xf32>
      %206 = vector.broadcast %205 : vector<1x32xf32> to vector<16x32xf32>
      %207 = arith.addf %202, %206 : vector<16x32xf32>
      %208 = arith.truncf %207 : vector<16x32xf32> to vector<16x32xbf16>
      %c0_115 = arith.constant 0 : index
      %c0_116 = arith.constant 0 : index
      %209 = vector.load %arg23[%c0_115, %c0_116] : memref<16x32xbf16, #tpu.memory_space<vmem>>, vector<16x32xbf16>
      tpu.vector_store %arg23[%c0_115, %c0_116], %208 {strides = array<i32>} : memref<16x32xbf16, #tpu.memory_space<vmem>>, vector<16x32xbf16>,
    } else {
    }
    %c8_i32 = arith.constant 8 : i32
    %3 = arith.muli %arg1, %c8_i32 : i32
    %4 = tpu.assume_multiple %3, 8 : i32
    %c0 = arith.constant 0 : index
    %5 = arith.index_cast %4 : i32 to index
    %c0_1 = arith.constant 0 : index
    %6 = vector.load %arg2[%c0, %5, %c0_1] : memref<1x16x32xf32, #tpu.memory_space<vmem>>, vector<1x8x32xf32>
    %7 = vector.shape_cast %6 : vector<1x8x32xf32> to vector<8x32xf32>
    %8 = arith.index_cast %4 : i32 to index
    %c0_2 = arith.constant 0 : index
    %9 = vector.load %arg21[%8, %c0_2] : memref<16x32xbf16, #tpu.memory_space<vmem>>, vector<8x32xbf16>
    %c0_3 = arith.constant 0 : index
    %c0_4 = arith.constant 0 : index
    %10 = vector.load %arg5[%c0_3, %c0_4] : memref<32x32xbf16, #tpu.memory_space<vmem>>, vector<32x32xbf16>
    %cst = arith.constant dense<0.000000e+00> : vector<8x32xf32>
    %11 = tpu.matmul %9, %10, %cst {dimension_numbers = #tpu.dot_dimension_numbers<[1], [0], [0], [1], [0, 0, 1, 1], [], []>} : vector<8x32xbf16>, vector<32x32xbf16>, vector<8x32xf32> -> vector<8x32xf32>
    %c0_5 = arith.constant 0 : index
    %c0_6 = arith.constant 0 : index
    %12 = vector.load %arg6[%c0_5, %c0_6] : memref<1x32xf32, #tpu.memory_space<vmem>>, vector<1x32xf32>
    %13 = vector.shape_cast %12 : vector<1x32xf32> to vector<32xf32>
    %14 = vector.shape_cast %13 : vector<32xf32> to vector<1x32xf32>
    %15 = vector.broadcast %14 : vector<1x32xf32> to vector<8x32xf32>
    %16 = arith.addf %11, %15 : vector<8x32xf32>
    %17 = arith.truncf %16 : vector<8x32xf32> to vector<8x32xbf16>
    %18 = vector.extract_strided_slice %17 {offsets = [0, 0], sizes = [8, 8], strides = [1, 1]} : vector<8x32xbf16> to vector<8x8xbf16>
    %c0_7 = arith.constant 0 : index
    %c0_8 = arith.constant 0 : index
    %19 = vector.load %arg22[%c0_7, %c0_8] : memref<16x32xbf16, #tpu.memory_space<vmem>>, vector<16x8xbf16>
    %cst_9 = arith.constant dense<0.000000e+00> : vector<8x16xf32>
    %20 = tpu.matmul %18, %19, %cst_9 {dimension_numbers = #tpu.dot_dimension_numbers<[1], [1], [0], [0], [0, 0, 1, 0], [], []>} : vector<8x8xbf16>, vector<16x8xbf16>, vector<8x16xf32> -> vector<8x16xf32>
    %cst_10 = arith.constant dense<0xFF800000> : vector<8xf32>
    %21 = vector.multi_reduction <maximumf>, %20, %cst_10 [1] : vector<8x16xf32> to vector<8xf32>
    %22 = vector.shape_cast %21 : vector<8xf32> to vector<8x1xf32>
    %23 = vector.broadcast %22 : vector<8x1xf32> to vector<8x16xf32>
    %24 = arith.subf %20, %23 : vector<8x16xf32>
    %25 = math.exp %24 : vector<8x16xf32>
    %cst_11 = arith.constant dense<0.000000e+00> : vector<8xf32>
    %26 = vector.multi_reduction <add>, %25, %cst_11 [1] : vector<8x16xf32> to vector<8xf32>
    %27 = vector.shape_cast %26 : vector<8xf32> to vector<8x1xf32>
    %28 = vector.broadcast %27 : vector<8x1xf32> to vector<8x16xf32>
    %29 = arith.divf %25, %28 : vector<8x16xf32>
    %c0_12 = arith.constant 0 : index
    %c0_13 = arith.constant 0 : index
    %c0_14 = arith.constant 0 : index
    %c0_15 = arith.constant 0 : index
    %30 = vector.load %arg20[%c0_12, %c0_13, %c0_14, %c0_15] : memref<1x4x8x16xf32, #tpu.memory_space<vmem>>, vector<1x1x8x16xf32>
    %31 = vector.shape_cast %30 : vector<1x1x8x16xf32> to vector<8x16xf32>
    %32 = vector.shape_cast %29 : vector<8x16xf32> to vector<1x1x8x16xf32>
    tpu.vector_store %arg20[%c0_12, %c0_13, %c0_14, %c0_15], %32 {strides = array<i32>} : memref<1x4x8x16xf32, #tpu.memory_space<vmem>>, vector<1x1x8x16xf32>,
    %c0_16 = arith.constant 0 : index
    %c0_17 = arith.constant 0 : index
    %33 = vector.load %arg23[%c0_16, %c0_17] : memref<16x32xbf16, #tpu.memory_space<vmem>>, vector<16x8xbf16>
    %34 = arith.truncf %29 : vector<8x16xf32> to vector<8x16xbf16>
    %cst_18 = arith.constant dense<0.000000e+00> : vector<8x8xf32>
    %35 = tpu.matmul %34, %33, %cst_18 {dimension_numbers = #tpu.dot_dimension_numbers<[1], [0], [0], [1], [0, 0, 1, 1], [], []>} : vector<8x16xbf16>, vector<16x8xbf16>, vector<8x8xf32> -> vector<8x8xf32>
    %c0_19 = arith.constant 0 : index
    %c0_20 = arith.constant 0 : index
    %36 = vector.load %arg24[%c0_19, %c0_20] : memref<8x32xf32, #tpu.memory_space<vmem>>, vector<8x8xf32>
    tpu.vector_store %arg24[%c0_19, %c0_20], %35 {strides = array<i32>} : memref<8x32xf32, #tpu.memory_space<vmem>>, vector<8x8xf32>,
    %37 = vector.extract_strided_slice %17 {offsets = [0, 8], sizes = [8, 8], strides = [1, 1]} : vector<8x32xbf16> to vector<8x8xbf16>
    %c0_21 = arith.constant 0 : index
    %c8 = arith.constant 8 : index
    %38 = vector.load %arg22[%c0_21, %c8] : memref<16x32xbf16, #tpu.memory_space<vmem>>, vector<16x8xbf16>
    %cst_22 = arith.constant dense<0.000000e+00> : vector<8x16xf32>
    %39 = tpu.matmul %37, %38, %cst_22 {dimension_numbers = #tpu.dot_dimension_numbers<[1], [1], [0], [0], [0, 0, 1, 0], [], []>} : vector<8x8xbf16>, vector<16x8xbf16>, vector<8x16xf32> -> vector<8x16xf32>
    %cst_23 = arith.constant dense<0xFF800000> : vector<8xf32>
    %40 = vector.multi_reduction <maximumf>, %39, %cst_23 [1] : vector<8x16xf32> to vector<8xf32>
    %41 = vector.shape_cast %40 : vector<8xf32> to vector<8x1xf32>
    %42 = vector.broadcast %41 : vector<8x1xf32> to vector<8x16xf32>
    %43 = arith.subf %39, %42 : vector<8x16xf32>
    %44 = math.exp %43 : vector<8x16xf32>
    %cst_24 = arith.constant dense<0.000000e+00> : vector<8xf32>
    %45 = vector.multi_reduction <add>, %44, %cst_24 [1] : vector<8x16xf32> to vector<8xf32>
    %46 = vector.shape_cast %45 : vector<8xf32> to vector<8x1xf32>
    %47 = vector.broadcast %46 : vector<8x1xf32> to vector<8x16xf32>
    %48 = arith.divf %44, %47 : vector<8x16xf32>
    %c0_25 = arith.constant 0 : index
    %c1 = arith.constant 1 : index
    %c0_26 = arith.constant 0 : index
    %c0_27 = arith.constant 0 : index
    %49 = vector.load %arg20[%c0_25, %c1, %c0_26, %c0_27] : memref<1x4x8x16xf32, #tpu.memory_space<vmem>>, vector<1x1x8x16xf32>
    %50 = vector.shape_cast %49 : vector<1x1x8x16xf32> to vector<8x16xf32>
    %51 = vector.shape_cast %48 : vector<8x16xf32> to vector<1x1x8x16xf32>
    tpu.vector_store %arg20[%c0_25, %c1, %c0_26, %c0_27], %51 {strides = array<i32>} : memref<1x4x8x16xf32, #tpu.memory_space<vmem>>, vector<1x1x8x16xf32>,
    %c0_28 = arith.constant 0 : index
    %c8_29 = arith.constant 8 : index
    %52 = vector.load %arg23[%c0_28, %c8_29] : memref<16x32xbf16, #tpu.memory_space<vmem>>, vector<16x8xbf16>
    %53 = arith.truncf %48 : vector<8x16xf32> to vector<8x16xbf16>
    %cst_30 = arith.constant dense<0.000000e+00> : vector<8x8xf32>
    %54 = tpu.matmul %53, %52, %cst_30 {dimension_numbers = #tpu.dot_dimension_numbers<[1], [0], [0], [1], [0, 0, 1, 1], [], []>} : vector<8x16xbf16>, vector<16x8xbf16>, vector<8x8xf32> -> vector<8x8xf32>
    %c0_31 = arith.constant 0 : index
    %c8_32 = arith.constant 8 : index
    %55 = vector.load %arg24[%c0_31, %c8_32] : memref<8x32xf32, #tpu.memory_space<vmem>>, vector<8x8xf32>
    tpu.vector_store %arg24[%c0_31, %c8_32], %54 {strides = array<i32>} : memref<8x32xf32, #tpu.memory_space<vmem>>, vector<8x8xf32>,
    %56 = vector.extract_strided_slice %17 {offsets = [0, 16], sizes = [8, 8], strides = [1, 1]} : vector<8x32xbf16> to vector<8x8xbf16>
    %c0_33 = arith.constant 0 : index
    %c16 = arith.constant 16 : index
    %57 = vector.load %arg22[%c0_33, %c16] : memref<16x32xbf16, #tpu.memory_space<vmem>>, vector<16x8xbf16>
    %cst_34 = arith.constant dense<0.000000e+00> : vector<8x16xf32>
    %58 = tpu.matmul %56, %57, %cst_34 {dimension_numbers = #tpu.dot_dimension_numbers<[1], [1], [0], [0], [0, 0, 1, 0], [], []>} : vector<8x8xbf16>, vector<16x8xbf16>, vector<8x16xf32> -> vector<8x16xf32>
    %cst_35 = arith.constant dense<0xFF800000> : vector<8xf32>
    %59 = vector.multi_reduction <maximumf>, %58, %cst_35 [1] : vector<8x16xf32> to vector<8xf32>
    %60 = vector.shape_cast %59 : vector<8xf32> to vector<8x1xf32>
    %61 = vector.broadcast %60 : vector<8x1xf32> to vector<8x16xf32>
    %62 = arith.subf %58, %61 : vector<8x16xf32>
    %63 = math.exp %62 : vector<8x16xf32>
    %cst_36 = arith.constant dense<0.000000e+00> : vector<8xf32>
    %64 = vector.multi_reduction <add>, %63, %cst_36 [1] : vector<8x16xf32> to vector<8xf32>
    %65 = vector.shape_cast %64 : vector<8xf32> to vector<8x1xf32>
    %66 = vector.broadcast %65 : vector<8x1xf32> to vector<8x16xf32>
    %67 = arith.divf %63, %66 : vector<8x16xf32>
    %c0_37 = arith.constant 0 : index
    %c2 = arith.constant 2 : index
    %c0_38 = arith.constant 0 : index
    %c0_39 = arith.constant 0 : index
    %68 = vector.load %arg20[%c0_37, %c2, %c0_38, %c0_39] : memref<1x4x8x16xf32, #tpu.memory_space<vmem>>, vector<1x1x8x16xf32>
    %69 = vector.shape_cast %68 : vector<1x1x8x16xf32> to vector<8x16xf32>
    %70 = vector.shape_cast %67 : vector<8x16xf32> to vector<1x1x8x16xf32>
    tpu.vector_store %arg20[%c0_37, %c2, %c0_38, %c0_39], %70 {strides = array<i32>} : memref<1x4x8x16xf32, #tpu.memory_space<vmem>>, vector<1x1x8x16xf32>,
    %c0_40 = arith.constant 0 : index
    %c16_41 = arith.constant 16 : index
    %71 = vector.load %arg23[%c0_40, %c16_41] : memref<16x32xbf16, #tpu.memory_space<vmem>>, vector<16x8xbf16>
    %72 = arith.truncf %67 : vector<8x16xf32> to vector<8x16xbf16>
    %cst_42 = arith.constant dense<0.000000e+00> : vector<8x8xf32>
    %73 = tpu.matmul %72, %71, %cst_42 {dimension_numbers = #tpu.dot_dimension_numbers<[1], [0], [0], [1], [0, 0, 1, 1], [], []>} : vector<8x16xbf16>, vector<16x8xbf16>, vector<8x8xf32> -> vector<8x8xf32>
    %c0_43 = arith.constant 0 : index
    %c16_44 = arith.constant 16 : index
    %74 = vector.load %arg24[%c0_43, %c16_44] : memref<8x32xf32, #tpu.memory_space<vmem>>, vector<8x8xf32>
    tpu.vector_store %arg24[%c0_43, %c16_44], %73 {strides = array<i32>} : memref<8x32xf32, #tpu.memory_space<vmem>>, vector<8x8xf32>,
    %75 = vector.extract_strided_slice %17 {offsets = [0, 24], sizes = [8, 8], strides = [1, 1]} : vector<8x32xbf16> to vector<8x8xbf16>
    %c0_45 = arith.constant 0 : index
    %c24 = arith.constant 24 : index
    %76 = vector.load %arg22[%c0_45, %c24] : memref<16x32xbf16, #tpu.memory_space<vmem>>, vector<16x8xbf16>
    %cst_46 = arith.constant dense<0.000000e+00> : vector<8x16xf32>
    %77 = tpu.matmul %75, %76, %cst_46 {dimension_numbers = #tpu.dot_dimension_numbers<[1], [1], [0], [0], [0, 0, 1, 0], [], []>} : vector<8x8xbf16>, vector<16x8xbf16>, vector<8x16xf32> -> vector<8x16xf32>
    %cst_47 = arith.constant dense<0xFF800000> : vector<8xf32>
    %78 = vector.multi_reduction <maximumf>, %77, %cst_47 [1] : vector<8x16xf32> to vector<8xf32>
    %79 = vector.shape_cast %78 : vector<8xf32> to vector<8x1xf32>
    %80 = vector.broadcast %79 : vector<8x1xf32> to vector<8x16xf32>
    %81 = arith.subf %77, %80 : vector<8x16xf32>
    %82 = math.exp %81 : vector<8x16xf32>
    %cst_48 = arith.constant dense<0.000000e+00> : vector<8xf32>
    %83 = vector.multi_reduction <add>, %82, %cst_48 [1] : vector<8x16xf32> to vector<8xf32>
    %84 = vector.shape_cast %83 : vector<8xf32> to vector<8x1xf32>
    %85 = vector.broadcast %84 : vector<8x1xf32> to vector<8x16xf32>
    %86 = arith.divf %82, %85 : vector<8x16xf32>
    %c0_49 = arith.constant 0 : index
    %c3 = arith.constant 3 : index
    %c0_50 = arith.constant 0 : index
    %c0_51 = arith.constant 0 : index
    %87 = vector.load %arg20[%c0_49, %c3, %c0_50, %c0_51] : memref<1x4x8x16xf32, #tpu.memory_space<vmem>>, vector<1x1x8x16xf32>
    %88 = vector.shape_cast %87 : vector<1x1x8x16xf32> to vector<8x16xf32>
    %89 = vector.shape_cast %86 : vector<8x16xf32> to vector<1x1x8x16xf32>
    tpu.vector_store %arg20[%c0_49, %c3, %c0_50, %c0_51], %89 {strides = array<i32>} : memref<1x4x8x16xf32, #tpu.memory_space<vmem>>, vector<1x1x8x16xf32>,
    %c0_52 = arith.constant 0 : index
    %c24_53 = arith.constant 24 : index
    %90 = vector.load %arg23[%c0_52, %c24_53] : memref<16x32xbf16, #tpu.memory_space<vmem>>, vector<16x8xbf16>
    %91 = arith.truncf %86 : vector<8x16xf32> to vector<8x16xbf16>
    %cst_54 = arith.constant dense<0.000000e+00> : vector<8x8xf32>
    %92 = tpu.matmul %91, %90, %cst_54 {dimension_numbers = #tpu.dot_dimension_numbers<[1], [0], [0], [1], [0, 0, 1, 1], [], []>} : vector<8x16xbf16>, vector<16x8xbf16>, vector<8x8xf32> -> vector<8x8xf32>
    %c0_55 = arith.constant 0 : index
    %c24_56 = arith.constant 24 : index
    %93 = vector.load %arg24[%c0_55, %c24_56] : memref<8x32xf32, #tpu.memory_space<vmem>>, vector<8x8xf32>
    tpu.vector_store %arg24[%c0_55, %c24_56], %92 {strides = array<i32>} : memref<8x32xf32, #tpu.memory_space<vmem>>, vector<8x8xf32>,
    %c0_57 = arith.constant 0 : index
    %c0_58 = arith.constant 0 : index
    %94 = vector.load %arg24[%c0_57, %c0_58] : memref<8x32xf32, #tpu.memory_space<vmem>>, vector<8x32xf32>
    %95 = arith.truncf %94 : vector<8x32xf32> to vector<8x32xbf16>
    %c0_59 = arith.constant 0 : index
    %c0_60 = arith.constant 0 : index
    %96 = vector.load %arg11[%c0_59, %c0_60] : memref<32x32xbf16, #tpu.memory_space<vmem>>, vector<32x32xbf16>
    %cst_61 = arith.constant dense<0.000000e+00> : vector<8x32xf32>
    %97 = tpu.matmul %95, %96, %cst_61 {dimension_numbers = #tpu.dot_dimension_numbers<[1], [0], [0], [1], [0, 0, 1, 1], [], []>} : vector<8x32xbf16>, vector<32x32xbf16>, vector<8x32xf32> -> vector<8x32xf32>
    %c0_62 = arith.constant 0 : index
    %c0_63 = arith.constant 0 : index
    %98 = vector.load %arg12[%c0_62, %c0_63] : memref<1x32xf32, #tpu.memory_space<vmem>>, vector<1x32xf32>
    %99 = vector.shape_cast %98 : vector<1x32xf32> to vector<32xf32>
    %100 = vector.shape_cast %99 : vector<32xf32> to vector<1x32xf32>
    %101 = vector.broadcast %100 : vector<1x32xf32> to vector<8x32xf32>
    %102 = arith.addf %97, %101 : vector<8x32xf32>
    %103 = arith.addf %102, %7 : vector<8x32xf32>
    %c0_64 = arith.constant 0 : index
    %c0_65 = arith.constant 0 : index
    %104 = vector.load %arg13[%c0_64, %c0_65] : memref<1x32xf32, #tpu.memory_space<vmem>>, vector<1x32xf32>
    %105 = vector.shape_cast %104 : vector<1x32xf32> to vector<32xf32>
    %c0_66 = arith.constant 0 : index
    %c0_67 = arith.constant 0 : index
    %106 = vector.load %arg14[%c0_66, %c0_67] : memref<1x32xf32, #tpu.memory_space<vmem>>, vector<1x32xf32>
    %107 = vector.shape_cast %106 : vector<1x32xf32> to vector<32xf32>
    %cst_68 = arith.constant dense<0.000000e+00> : vector<8xf32>
    %108 = vector.multi_reduction <add>, %103, %cst_68 [1] : vector<8x32xf32> to vector<8xf32>
    %109 = vector.shape_cast %108 : vector<8xf32> to vector<8x1xf32>
    %cst_69 = arith.constant 3.200000e+01 : f32
    %110 = vector.broadcast %cst_69 : f32 to vector<8x1xf32>
    %111 = arith.divf %109, %110 : vector<8x1xf32>
    %112 = vector.broadcast %111 : vector<8x1xf32> to vector<8x32xf32>
    %113 = arith.subf %103, %112 : vector<8x32xf32>
    %114 = arith.mulf %113, %113 : vector<8x32xf32>
    %cst_70 = arith.constant dense<0.000000e+00> : vector<8xf32>
    %115 = vector.multi_reduction <add>, %114, %cst_70 [1] : vector<8x32xf32> to vector<8xf32>
    %116 = vector.shape_cast %115 : vector<8xf32> to vector<8x1xf32>
    %cst_71 = arith.constant 3.200000e+01 : f32
    %117 = vector.broadcast %cst_71 : f32 to vector<8x1xf32>
    %118 = arith.divf %116, %117 : vector<8x1xf32>
    %119 = vector.broadcast %111 : vector<8x1xf32> to vector<8x32xf32>
    %120 = arith.subf %103, %119 : vector<8x32xf32>
    %cst_72 = arith.constant 9.99999997E-7 : f32
    %121 = vector.broadcast %cst_72 : f32 to vector<8x1xf32>
    %122 = arith.addf %118, %121 : vector<8x1xf32>
    %123 = math.rsqrt %122 : vector<8x1xf32>
    %124 = vector.broadcast %123 : vector<8x1xf32> to vector<8x32xf32>
    %125 = arith.mulf %120, %124 : vector<8x32xf32>
    %126 = vector.shape_cast %105 : vector<32xf32> to vector<1x32xf32>
    %127 = vector.broadcast %126 : vector<1x32xf32> to vector<8x32xf32>
    %128 = arith.mulf %125, %127 : vector<8x32xf32>
    %129 = vector.shape_cast %107 : vector<32xf32> to vector<1x32xf32>
    %130 = vector.broadcast %129 : vector<1x32xf32> to vector<8x32xf32>
    %131 = arith.addf %128, %130 : vector<8x32xf32>
    %132 = arith.truncf %131 : vector<8x32xf32> to vector<8x32xbf16>
    %c0_73 = arith.constant 0 : index
    %c0_74 = arith.constant 0 : index
    %133 = vector.load %arg15[%c0_73, %c0_74] : memref<32x64xbf16, #tpu.memory_space<vmem>>, vector<32x64xbf16>
    %cst_75 = arith.constant dense<0.000000e+00> : vector<8x64xf32>
    %134 = tpu.matmul %132, %133, %cst_75 {dimension_numbers = #tpu.dot_dimension_numbers<[1], [0], [0], [1], [0, 0, 1, 1], [], []>} : vector<8x32xbf16>, vector<32x64xbf16>, vector<8x64xf32> -> vector<8x64xf32>
    %c0_76 = arith.constant 0 : index
    %c0_77 = arith.constant 0 : index
    %135 = vector.load %arg16[%c0_76, %c0_77] : memref<1x64xf32, #tpu.memory_space<vmem>>, vector<1x64xf32>
    %136 = vector.shape_cast %135 : vector<1x64xf32> to vector<64xf32>
    %137 = vector.shape_cast %136 : vector<64xf32> to vector<1x64xf32>
    %138 = vector.broadcast %137 : vector<1x64xf32> to vector<8x64xf32>
    %139 = arith.addf %134, %138 : vector<8x64xf32>
    %cst_78 = arith.constant 5.000000e-01 : f32
    %140 = vector.broadcast %cst_78 : f32 to vector<8x64xf32>
    %141 = arith.mulf %140, %139 : vector<8x64xf32>
    %cst_79 = arith.constant 0.707106769 : f32
    %142 = vector.broadcast %cst_79 : f32 to vector<8x64xf32>
    %143 = arith.mulf %139, %142 : vector<8x64xf32>
    %144 = math.erf %143 : vector<8x64xf32>
    %cst_80 = arith.constant 1.000000e+00 : f32
    %145 = vector.broadcast %cst_80 : f32 to vector<8x64xf32>
    %146 = arith.addf %145, %144 : vector<8x64xf32>
    %147 = arith.mulf %141, %146 : vector<8x64xf32>
    %148 = arith.truncf %147 : vector<8x64xf32> to vector<8x64xbf16>
    %c0_81 = arith.constant 0 : index
    %c0_82 = arith.constant 0 : index
    %149 = vector.load %arg17[%c0_81, %c0_82] : memref<64x32xbf16, #tpu.memory_space<vmem>>, vector<64x32xbf16>
    %cst_83 = arith.constant dense<0.000000e+00> : vector<8x32xf32>
    %150 = tpu.matmul %148, %149, %cst_83 {dimension_numbers = #tpu.dot_dimension_numbers<[1], [0], [0], [1], [0, 0, 1, 1], [], []>} : vector<8x64xbf16>, vector<64x32xbf16>, vector<8x32xf32> -> vector<8x32xf32>
    %c0_84 = arith.constant 0 : index
    %c0_85 = arith.constant 0 : index
    %151 = vector.load %arg18[%c0_84, %c0_85] : memref<1x32xf32, #tpu.memory_space<vmem>>, vector<1x32xf32>
    %152 = vector.shape_cast %151 : vector<1x32xf32> to vector<32xf32>
    %153 = vector.shape_cast %152 : vector<32xf32> to vector<1x32xf32>
    %154 = vector.broadcast %153 : vector<1x32xf32> to vector<8x32xf32>
    %155 = arith.addf %150, %154 : vector<8x32xf32>
    %156 = arith.addf %155, %103 : vector<8x32xf32>
    %c0_86 = arith.constant 0 : index
    %c0_87 = arith.constant 0 : index
    %c0_88 = arith.constant 0 : index
    %157 = vector.load %arg19[%c0_86, %c0_87, %c0_88] : memref<1x8x32xf32, #tpu.memory_space<vmem>>, vector<1x8x32xf32>
    %158 = vector.shape_cast %157 : vector<1x8x32xf32> to vector<8x32xf32>
    %159 = vector.shape_cast %156 : vector<8x32xf32> to vector<1x8x32xf32>
    tpu.vector_store %arg19[%c0_86, %c0_87, %c0_88], %159 {strides = array<i32>} : memref<1x8x32xf32, #tpu.memory_space<vmem>>, vector<1x8x32xf32>,
    return
  }
  func.func @transform_0(%arg0: i32, %arg1: i32) -> (i32, i32, i32) {
    %c0_i32 = arith.constant 0 : i32
    %c0_i32_0 = arith.constant 0 : i32
    %c0_i32_1 = arith.constant 0 : i32
    return %arg0, %c0_i32, %c0_i32_0 : i32, i32, i32
  }
  func.func @transform_1(%arg0: i32, %arg1: i32) -> (i32, i32) {
    %c0_i32 = arith.constant 0 : i32
    %c0_i32_0 = arith.constant 0 : i32
    %c0_i32_1 = arith.constant 0 : i32
    return %c0_i32, %c0_i32_0 : i32, i32
  }
  func.func @transform_2(%arg0: i32, %arg1: i32) -> (i32, i32) {
    %c0_i32 = arith.constant 0 : i32
    %c0_i32_0 = arith.constant 0 : i32
    %c0_i32_1 = arith.constant 0 : i32
    return %c0_i32, %c0_i32_0 : i32, i32
  }
  func.func @transform_3(%arg0: i32, %arg1: i32) -> (i32, i32) {
    %c0_i32 = arith.constant 0 : i32
    %c0_i32_0 = arith.constant 0 : i32
    %c0_i32_1 = arith.constant 0 : i32
    return %c0_i32, %c0_i32_0 : i32, i32
  }
  func.func @transform_4(%arg0: i32, %arg1: i32) -> (i32, i32) {
    %c0_i32 = arith.constant 0 : i32
    %c0_i32_0 = arith.constant 0 : i32
    %c0_i32_1 = arith.constant 0 : i32
    return %c0_i32, %c0_i32_0 : i32, i32
  }
  func.func @transform_5(%arg0: i32, %arg1: i32) -> (i32, i32) {
    %c0_i32 = arith.constant 0 : i32
    %c0_i32_0 = arith.constant 0 : i32
    %c0_i32_1 = arith.constant 0 : i32
    return %c0_i32, %c0_i32_0 : i32, i32
  }
  func.func @transform_6(%arg0: i32, %arg1: i32) -> (i32, i32) {
    %c0_i32 = arith.constant 0 : i32
    %c0_i32_0 = arith.constant 0 : i32
    %c0_i32_1 = arith.constant 0 : i32
    return %c0_i32, %c0_i32_0 : i32, i32
  }
  func.func @transform_7(%arg0: i32, %arg1: i32) -> (i32, i32) {
    %c0_i32 = arith.constant 0 : i32
    %c0_i32_0 = arith.constant 0 : i32
    %c0_i32_1 = arith.constant 0 : i32
    return %c0_i32, %c0_i32_0 : i32, i32
  }
  func.func @transform_8(%arg0: i32, %arg1: i32) -> (i32, i32) {
    %c0_i32 = arith.constant 0 : i32
    %c0_i32_0 = arith.constant 0 : i32
    %c0_i32_1 = arith.constant 0 : i32
    return %c0_i32, %c0_i32_0 : i32, i32
  }
  func.func @transform_9(%arg0: i32, %arg1: i32) -> (i32, i32) {
    %c0_i32 = arith.constant 0 : i32
    %c0_i32_0 = arith.constant 0 : i32
    %c0_i32_1 = arith.constant 0 : i32
    return %c0_i32, %c0_i32_0 : i32, i32
  }
  func.func @transform_10(%arg0: i32, %arg1: i32) -> (i32, i32) {
    %c0_i32 = arith.constant 0 : i32
    %c0_i32_0 = arith.constant 0 : i32
    %c0_i32_1 = arith.constant 0 : i32
    return %c0_i32, %c0_i32_0 : i32, i32
  }
  func.func @transform_11(%arg0: i32, %arg1: i32) -> (i32, i32) {
    %c0_i32 = arith.constant 0 : i32
    %c0_i32_0 = arith.constant 0 : i32
    %c0_i32_1 = arith.constant 0 : i32
    return %c0_i32, %c0_i32_0 : i32, i32
  }
  func.func @transform_12(%arg0: i32, %arg1: i32) -> (i32, i32) {
    %c0_i32 = arith.constant 0 : i32
    %c0_i32_0 = arith.constant 0 : i32
    %c0_i32_1 = arith.constant 0 : i32
    return %c0_i32, %c0_i32_0 : i32, i32
  }
  func.func @transform_13(%arg0: i32, %arg1: i32) -> (i32, i32) {
    %c0_i32 = arith.constant 0 : i32
    %c0_i32_0 = arith.constant 0 : i32
    %c0_i32_1 = arith.constant 0 : i32
    return %c0_i32, %c0_i32_0 : i32, i32
  }
  func.func @transform_14(%arg0: i32, %arg1: i32) -> (i32, i32) {
    %c0_i32 = arith.constant 0 : i32
    %c0_i32_0 = arith.constant 0 : i32
    %c0_i32_1 = arith.constant 0 : i32
    return %c0_i32, %c0_i32_0 : i32, i32
  }
  func.func @transform_15(%arg0: i32, %arg1: i32) -> (i32, i32) {
    %c0_i32 = arith.constant 0 : i32
    %c0_i32_0 = arith.constant 0 : i32
    %c0_i32_1 = arith.constant 0 : i32
    return %c0_i32, %c0_i32_0 : i32, i32
  }
  func.func @transform_16(%arg0: i32, %arg1: i32) -> (i32, i32) {
    %c0_i32 = arith.constant 0 : i32
    %c0_i32_0 = arith.constant 0 : i32
    %c0_i32_1 = arith.constant 0 : i32
    return %c0_i32, %c0_i32_0 : i32, i32
  }
  func.func @transform_17(%arg0: i32, %arg1: i32) -> (i32, i32, i32) {
    %c0_i32 = arith.constant 0 : i32
    %c0_i32_0 = arith.constant 0 : i32
    return %arg0, %arg1, %c0_i32 : i32, i32, i32
  }
  func.func @transform_18(%arg0: i32, %arg1: i32) -> (i32, i32, i32, i32) {
    %c0_i32 = arith.constant 0 : i32
    %c0_i32_0 = arith.constant 0 : i32
    %c0_i32_1 = arith.constant 0 : i32
    return %arg0, %c0_i32, %arg1, %c0_i32_0 : i32, i32, i32, i32
  }
}

</mosaic_0001>

<bundles_post_ra>
// kernel: block_forward.1
= control target key start
LH: loop header
LB: loop body
LE: loop exit
PB: predicated region body
PF: predicated region fallthrough
CT: control target
= control target key end

     0   :  { %s2942_s0 = inlined_call_operand.vmem [shape: f32[2,16,32], index: 0, kind: input, shape index: {}]   ;;  %s2943_s1 = inlined_call_operand.vmem [shape: f32[1,32], index: 1, kind: input, shape index: {}]   ;;  %s2944_s2 = inlined_call_operand.vmem [shape: f32[1,32], index: 2, kind: input, shape index: {}]   ;;  %s2945_s3 = inlined_call_operand.vmem [shape: bf16[32,32], index: 3, kind: input, shape index: {}]   ;;  %s2946_s4 = inlined_call_operand.vmem [shape: f32[1,32], index: 4, kind: input, shape index: {}]   ;;  %s2947_s5 = inlined_call_operand.hbm [shape: bf16[32,32], index: 5, kind: input, shape index: {}]   ;;  %s2948_s6 = inlined_call_operand.hbm [shape: f32[1,32], index: 6, kind: input, shape index: {}]   ;;  %s2949_s7 = inlined_call_operand.hbm [shape: bf16[32,32], index: 7, kind: input, shape index: {}]   ;;  %s2950_s8 = inlined_call_operand.vmem [shape: f32[1,32], index: 8, kind: input, shape index: {}]   ;;  %s2951_s9 = inlined_call_operand.hbm [shape: bf16[32,32], index: 9, kind: input, shape index: {}]   ;;  %s2952_s10 = inlined_call_operand.hbm [shape: f32[1,32], index: 10, kind: input, shape index: {}]   ;;  %s2953_s11 = inlined_call_operand.vmem [shape: f32[1,32], index: 11, kind: input, shape index: {}]   ;;  %s2954_s12 = inlined_call_operand.vmem [shape: f32[1,32], index: 12, kind: input, shape index: {}]   ;;  %s2955_s13 = inlined_call_operand.hbm [shape: bf16[32,64], index: 13, kind: input, shape index: {}]   ;;  %s2956_s14 = inlined_call_operand.hbm [shape: f32[1,64], index: 14, kind: input, shape index: {}]   ;;  %s2957_s15 = inlined_call_operand.vmem [shape: bf16[64,32], index: 15, kind: input, shape index: {}]   ;;  %s2958_s16 = inlined_call_operand.hbm [shape: f32[1,32], index: 16, kind: input, shape index: {}]   ;;  %s2959_s17 = inlined_call_operand.hbm [shape: f32[2,16,32], index: 17, kind: output, shape index: {0}]   ;;  %s2960_s18 = inlined_call_operand.hbm [shape: f32[2,4,16,16], index: 18, kind: output, shape index: {1}]  }
   0x1   :  { %2976 = sst [smem:[#allocation40_spill]] %s2942_s0 }
   0x2   :  { %2977 = sst [smem:[#allocation41_spill]] %s2943_s1 }
   0x3   :  { %2978 = sst [smem:[#allocation42_spill]] %s2944_s2 }
   0x4   :  { %2979 = sst [smem:[#allocation43_spill]] %s2945_s3 }
   0x5   :  { %2980 = sst [smem:[#allocation44_spill]] %s2946_s4 }
   0x6   :  { %2981 = sst [smem:[#allocation45_spill]] %s2947_s5 }
   0x7   :  { %2982 = sst [smem:[#allocation46_spill]] %s2948_s6 }
   0x8   :  { %2983 = sst [smem:[#allocation47_spill]] %s2951_s9 }
   0x9   :  { %2984 = sst [smem:[#allocation48_spill]] %s2957_s15 }
   0xa   :  { %2985 = sst [smem:[#allocation49_spill]] %s2959_s17 }
   0xb   :  { %2986 = sst [smem:[#allocation50_spill]] %s2960_s18 }
   0xc   :  { %24 = vsyncpa [#allocation7], 0 }
   0xd   :  { %25 = vsyncpa [#allocation10], 0 }
   0xe   :  { %26 = vsyncpa [#allocation13], 0 }
   0xf   :  { %27 = vsyncpa [#allocation16], 0 }
  0x10   :  { %28 = vsyncpa [#allocation19], 0 }
  0x11   :  { %29 = vsyncpa [#allocation8], 0 }
  0x12   :  { %31 = vsyncpa [#allocation8 + $0x1], 0 }
  0x13   :  { %32 = vsyncpa [#allocation22], 0 }
  0x14   :  { %34 = vsyncpa [#allocation22 + $0x1], 0  ;;  %s2602_s27 = smov 0   ;;  %s2604_s28 = smov 0  }
  0x15   :  { %s2606_s29 = smov 0   ;;  %s2608_s30 = smov 0  }
  0x16   :  { %s2610_s0 = smov 0   ;;  %s2612_s19 = smov 0  }
  0x17   :  { %s2614_s1 = smov 0   ;;  %s2616_s20 = smov 0  }
  0x18 LB: > { %2987 = sst [smem:[#allocation30_spill]] %s2457_s27  ;;  %s1727_s21 = sadd.s32 4294967295, %s2485_s20   ;;  %s2485_s20 = sphi %s2616_s20, %s40_s20   ;;  %s2481_s1 = sphi %s2614_s1, %s3023_s1   ;;  %s2477_s19 = sphi %s2612_s19, %s3022_s19   ;;  %s2473_s0 = sphi %s2610_s0, %s3021_s0   ;;  %s2469_s30 = sphi %s2608_s30, %s3020_s30   ;;  %s2465_s29 = sphi %s2606_s29, %s3019_s29   ;;  %s2461_s28 = sphi %s2604_s28, %s3025_s28   ;;  %s2457_s27 = sphi %s2602_s27, %s3024_s27  }
  0x19   : > { %2988 = sst [smem:[#allocation31_spill]] %s2465_s29  ;;  %s1728_s22 = sadd.s32 4294967294, %s2485_s20  }
  0x1a   : > { %2989 = sst [smem:[#allocation32_spill]] %s2477_s19  ;;  %s49_s2 = sadd.s32 1, %s2477_s19 }
  0x1b   : > { %2990 = sst [smem:[#allocation33_spill]] %s2481_s1  ;;  %s52_s23 = sadd.s32 1, %s2481_s1 }
  0x1c   : > { %2991 = sst [smem:[#allocation34_spill]] %s2485_s20  ;;  %p50_p0 = scmp.ge.s32.totalorder %s49_s2, 2 }
  0x1d   : > { %s423_s24 = sadd.s32 1, %s2465_s29  ;;  %p433_p1 = scmp.ne.s32.totalorder %s2465_s29, %s2461_s28 }
  0x1e   : > { %p434_p2 = scmp.eq.s32.totalorder %s1727_s21, 3  ;;  %s3027_s2 = smov (%p50_p0, %s49_s2), 0 }
  0x1f   : > { %2992 = sst [smem:[#allocation35_spill]] %s3027_s2  ;;  %s3029_s23 = smov (!%p50_p0, %s52_s23), %s2481_s1 }
  0x20   : > { %s419_s25 = ssub.s32 %s2477_s19, %s3027_s2  ;;  %p2654_p3 = por %p434_p2, %p433_p1 }
  0x21   : > { %p54_p4 = scmp.ge.s32.totalorder %s3029_s23, 2  ;;  %p439_p5 = scmp.ne.s32.totalorder %s2461_s28, %s2457_s27 }
  0x22   : > { %s2993_s26 = scalar_select %p2654_p3, 1, 0 }
  0x23   : > { %p440_p6 = scmp.eq.s32.totalorder %s1728_s22, 3  ;;  %p1729_p7 = scmp.ge.s32.totalorder %s2485_s20, 1 }
  0x24   : > { %2994 = sst [smem:[#allocation36_spill]] %s2993_s26  ;;  %s3031_s23 = smov (%p54_p4, %s3029_s23), 0 }
  0x25   : > { %2995 = sst [smem:[#allocation37_spill]] %s3031_s23  ;;  %p2663_p8 = por %p440_p6, %p439_p5 }
  0x26   : > { %p475_p9 = scmp.lt.s32.totalorder %s2485_s20, 5  ;;  %s418_s18 = ssub.s32 %s2481_s1, %s3031_s23 }
  0x27   : > { %s2996_s17 = scalar_select %p2663_p8, 1, 0 }
  0x28   : > { %s420_s15 = sor.u32 %s419_s25, %s418_s18  ;;  %p2670_p10 = pnand %p1729_p7, %p475_p9 }
  0x29   : > { %2997 = sst [smem:[#allocation38_spill]] %s2996_s17  ;;  %p421_p11 = scmp.eq.s32.totalorder %s420_s15, 0 }
  0x2a   : > { %p2674_p12 = scmp.eq.s32.totalorder %s1727_s21, 0  ;;  %p1928_p13 = pneg %p2670_p10 }
  0x2b   : > { %s3000_s6 = sld [smem:[#allocation46_spill]]  ;;  %s2487_s15 = smov [#allocation9]  }
  0x2c   : > { %s2684_s20 = scalar_select %p421_p11, %s2465_s29, %s423_s24  }
  0x2d   : > { %p2688_p0 = pnand %p2674_p12, %p1928_p13  ;;  %s515_s21 = sshll.u32 %s2487_s15, 4  ;;  %s516_s21 = int_to_ptr.vmem [resolvable:$true] %s515_s21 }
  0x2e   : > { %3001 = sst [smem:[#allocation39_spill]] %s2684_s20  ;;  %s2488_s24 = smov [#allocation12]  }
  0x2f   : > { %s3003_s9 = sld [smem:[#allocation47_spill]]  ;;  %s543_s22 = sshll.u32 %s2488_s24, 4  ;;  %s544_s22 = int_to_ptr.vmem [resolvable:$true] %s543_s22 }
  0x30   : > { %s573_s20 = sshll.u32 %s2955_s13, 4  ;;  %s2489_s29 = smov 64   ;;  %s574_s20 = int_to_ptr.hbm [resolvable:$true] %s573_s20 }
  0x31   : > { %s513_s17 = sshll.u32 %s3000_s6, 4  ;;  %s2490_s26 = smov 4   ;;  %s514_s17 = int_to_ptr.hbm [resolvable:$true] %s513_s17 }
  0x32   : > { %1934 = dma.hbm_to_vmem [thread:$0]  (!%p2688_p0), %s514_s17, 16, %s516_s21, [#allocation10]  }
  0x33   : > { %s2491_s15 = smov [#allocation15]   ;;  %s3004_s5 = sld [smem:[#allocation45_spill]] }
  0x34   : > { %s575_s17 = sshll.u32 %s2491_s15, 4  ;;  %s2492_s24 = smov [#allocation6]   ;;  %s576_s17 = int_to_ptr.vmem [resolvable:$true] %s575_s17 }
  0x35   : > { %s541_s27 = sshll.u32 %s3003_s9, 4  ;;  %s500_s6 = sshll.u32 %s2492_s24, 4  ;;  %s542_s27 = int_to_ptr.hbm [resolvable:$true] %s541_s27  ;;  %s501_s6 = int_to_ptr.vmem [resolvable:$true] %s500_s6 }
  0x36   : > { %1940 = dma.hbm_to_vmem [thread:$0]  (!%p2688_p0), %s542_s27, 256, %s544_s22, [#allocation13], %s2489_s29, %s2489_s29, %s2490_s26  }
  0x37   : > { %1946 = dma.hbm_to_vmem [thread:$0]  (!%p2688_p0), %s574_s20, 256, %s576_s17, [#allocation16], %s2489_s29, %s2489_s29, %s2490_s26  }
  0x38   : > { %s524_s27 = sshll.u32 %s2949_s7, 4  ;;  %s2493_s22 = smov [#allocation11]   ;;  %s525_s27 = int_to_ptr.hbm [resolvable:$true] %s524_s27 }
  0x39   : > { %s498_s25 = sshll.u32 %s3004_s5, 4  ;;  %s526_s15 = sshll.u32 %s2493_s22, 4  ;;  %s499_s25 = int_to_ptr.hbm [resolvable:$true] %s498_s25  ;;  %s527_s15 = int_to_ptr.vmem [resolvable:$true] %s526_s15 }
  0x3a   : > { %1931 = dma.hbm_to_vmem [thread:$0]  (!%p2688_p0), %s499_s25, 256, %s501_s6, [#allocation7], %s2489_s29, %s2489_s29, %s2490_s26  }
  0x3b   : > { %s556_s23 = sshll.u32 %s2952_s10, 4  ;;  %s588_s9 = sshll.u32 %s2956_s14, 4  ;;  %s557_s23 = int_to_ptr.hbm [resolvable:$true] %s556_s23  ;;  %s589_s9 = int_to_ptr.hbm [resolvable:$true] %s588_s9 }
  0x3c   : > { %1937 = dma.hbm_to_vmem [thread:$0]  (!%p2688_p0), %s525_s27, 256, %s527_s15, [#allocation10], %s2489_s29, %s2489_s29, %s2490_s26  }
  0x3d   : > { %s2494_s1 = smov [#allocation14]   ;;  %s2495_s25 = smov [#allocation17]  }
  0x3e   : > { %s558_s5 = sshll.u32 %s2494_s1, 4  ;;  %s590_s6 = sshll.u32 %s2495_s25, 4  ;;  %s559_s5 = int_to_ptr.vmem [resolvable:$true] %s558_s5  ;;  %s591_s6 = int_to_ptr.vmem [resolvable:$true] %s590_s6 }
  0x3f   : > { %1943 = dma.hbm_to_vmem [thread:$0]  (!%p2688_p0), %s557_s23, 16, %s559_s5, [#allocation13]  }
  0x40   : > { %s603_s17 = sshll.u32 %s2958_s16, 4  ;;  %s2496_s29 = smov [#allocation18]   ;;  %s604_s17 = int_to_ptr.hbm [resolvable:$true] %s603_s17 }
  0x41   : > { %1949 = dma.hbm_to_vmem [thread:$0]  (!%p2688_p0), %s589_s9, 16, %s591_s6, [#allocation16]  }
  0x42   : > { %s605_s26 = sshll.u32 %s2496_s29, 4  ;;  %626 = sbr.rel (%p2670_p10) target bundleno = 2196 (0x894), region = 88  ;;  %s606_s26 = int_to_ptr.vmem [resolvable:$true] %s605_s26 }
  0x43   : > { %1952 = dma.hbm_to_vmem [thread:$0]  (!%p2688_p0), %s604_s17, 16, %s606_s26, [#allocation19]  }
  0x47   : > { %2428 = dma.done.wait (%p2674_p12), [#allocation7], 256  }
  0x48   : > { %2430 = vsyncadd (%p2674_p12), [#allocation7], 4294967040 }
  0x49   : > { %2432 = dma.done.wait (%p2674_p12), [#allocation10], 272  }
  0x4a   : > { %2434 = vsyncadd (%p2674_p12), [#allocation10], 4294967024 }
  0x4b   : > { %2436 = dma.done.wait (%p2674_p12), [#allocation13], 272  }
  0x4c   : > { %2438 = vsyncadd (%p2674_p12), [#allocation13], 4294967024 }
  0x4d   : > { %2440 = dma.done.wait (%p2674_p12), [#allocation16], 272  }
  0x4e   : > { %2442 = vsyncadd (%p2674_p12), [#allocation16], 4294967024 }
  0x4f   : > { %2444 = dma.done.wait (%p2674_p12), [#allocation19], 16  }
  0x50   : > { %2446 = vsyncadd (%p2674_p12), [#allocation19], 4294967280  ;;  %s2752_s5 = sand.u32 1, %s2461_s28   ;;  %p721_p1 = scmp.lt.s32.totalorder %s2473_s0, 1 }
  0x51   : > { %s1748_s2 = sshll.u32 %s2752_s5, 3  ;;  %s1749_s18 = sshll.u32 %s2752_s5, 5 }
  0x52   : > { %s722_s27 = scalar_select %p721_p1, %s2473_s0, 1 }
  0x53   : > { %s3005_s24 = sld [smem:[#allocation40_spill]]  ;;  %s2763_s1 = scalar_lea.vmem [#allocation20], %s1748_s2 }
  0x54   : > { %s1869_s15 = sshll.u32 %s722_s27, 4  ;;  %s2765_s19 = scalar_lea.vmem [#allocation21], %s1749_s18 }
  0x55   : > { %p1752_p2 = scmp.ne.s32.totalorder %s2469_s30, 0 }
  0x56   : > { %s3006_s22 = sld [smem:[#allocation41_spill]] (!%p1752_p2) }
  0x57   : > { %730 = sbr.rel (%p1752_p2) target bundleno = 515 (0x203), region = 124  ;;  %s3007_s29 = sld [smem:[#allocation42_spill]] (!%p1752_p2) }
  0x59   : > { %s2761_s9 = scalar_lea.vmem %s3005_s24, %s1869_s15 }
  0x5c   : > { %v731_v0 = vld [vmem:[%s2761_s9] sm:$0xff]  ;;  %vm735_vm0 = vcmask 261120   ;;  %v732_v2 = vld [vmem:[%s2761_s9 + $0x8] sm:$0xff]  ;;  %v2497_v4 = vmov 32.0   ;;  %v1872_v26 = vld [vmem:[#allocation11] sm:$0xff]  ;;  %vm799_vm7 = vcmask 257024  }
  0x5d   : > { %v736_v1 = vsel %vm735_vm0, %v731_v0, 0.0  ;;  %v739_v3 = vsel %vm735_vm0, %v732_v2, 0.0  ;;  %2065 = vrcp.f32 %v2497_v4  ;;  %v1871_v21 = vld [vmem:[#allocation6 + $0x8] sm:$0xff]  ;;  %v1873_v22 = vld [vmem:[#allocation11 + $0x8] sm:$0xff]  ;;  %v2063_v58 = vld [vmem:[#allocation9] ss:$0 sm:$0xff] }
  0x5e   : > { %737 = vadd.xlane.f32.xlu0 %v736_v1  ;;  %836 = vmatpush.bf16.msra.mxu0 %v1871_v21  ;;  %v1870_v25 = vld [vmem:[#allocation6] sm:$0xff] }
  0x5f   : > { %874 = vmatpush.bf16.msra.mxu1 %v1873_v22  ;;  %v2061_v39 = vld [vmem:[%s3006_s22] ss:$0 sm:$0xff] }
  0x60   : > { %v2062_v43 = vld [vmem:[%s3007_s29] ss:$0 sm:$0xff] }
  0x61   : > { %v2064_v59 = vld [vmem:[%s2950_s8] ss:$0 sm:$0xff] }
  0x62   : > { %837 = vmatpush.bf16.msra.mxu0 %v1870_v25 }
  0x63   : > { %v2066_v5 = vpop.eup %2065  ;;  %875 = vmatpush.bf16.msra.mxu1 %v1872_v26 }
  0x64   : > { %v743_v6 = vmul.f32 32.0, %v2066_v5  ;;  %vm747_vm1 = vweird.f32 %v2066_v5 }
  0x66   : > { %740 = vadd.xlane.f32.xlu0 %v739_v3  ;;  %v744_v7 = vsub.f32 1.0, %v743_v6 }
  0x68   : > { %v745_v8 = vmul.f32 %v2066_v5, %v744_v7 }
  0x6a   : > { %v746_v9 = vadd.f32 %v2066_v5, %v745_v8 }
  0x6c   : > { %v748_v10 = vsel %vm747_vm1, %v2066_v5, %v746_v9 }
  0xd1   : > { %v738_v11 = vpop.xlane.xlu0 %737 }
  0xd2   : > { %v749_v12 = vmul.f32 %v748_v10, %v738_v11 }
  0xd4   : > { %v751_v13 = vsub.f32 %v731_v0, %v749_v12 }
  0xd6   : > { %v753_v14 = vmul.f32 %v751_v13, %v751_v13 }
  0xd8   : > { %v755_v15 = vsel %vm735_vm0, %v753_v14, 0.0 }
  0xd9   : > { %756 = vadd.xlane.f32.xlu1 %v755_v15  ;;  %v741_v16 = vpop.xlane.xlu0 %740 }
  0xda   : > { %v750_v17 = vmul.f32 %v748_v10, %v741_v16 }
  0xdc   : > { %v752_v18 = vsub.f32 %v732_v2, %v750_v17 }
  0xde   : > { %v754_v19 = vmul.f32 %v752_v18, %v752_v18 }
  0xe0   : > { %v758_v20 = vsel %vm735_vm0, %v754_v19, 0.0 }
  0xe1   : > { %759 = vadd.xlane.f32.xlu1 %v758_v20 }
 0x14c   : > { %v757_v23 = vpop.xlane.xlu1 %756 }
 0x14d   : > { %v761_v24 = vmul.f32 %v757_v23, %v748_v10 }
 0x14f   : > { %v763_v27 = vadd.f32 1e-06, %v761_v24 }
 0x151   : > { %2067 = vrsqrt.f32 %v763_v27  ;;  %vm771_vm3 = vweird.f32 %v763_v27 }
 0x154   : > { %v760_v28 = vpop.xlane.xlu1 %759 }
 0x155   : > { %v762_v29 = vmul.f32 %v760_v28, %v748_v10 }
 0x157   : > { %v2068_v30 = vpop.eup %2067  ;;  %v764_v31 = vadd.f32 1e-06, %v762_v29 }
 0x158   : > { %v766_v32 = vmul.f32 %v2068_v30, %v763_v27  ;;  %vm772_vm2 = vweird.f32 %v2068_v30 }
 0x159   : > { %2069 = vrsqrt.f32 %v764_v31  ;;  %vm773_vm4 = vmor %vm771_vm3, %vm772_vm2  ;;  %vm781_vm6 = vweird.f32 %v764_v31 }
 0x15a   : > { %v767_v33 = vmul.f32 %v2068_v30, %v766_v32 }
 0x15c   : > { %v768_v34 = vmul.f32 0.5, %v767_v33 }
 0x15e   : > { %v769_v35 = vsub.f32 1.5, %v768_v34 }
 0x15f   : > { %v2070_v36 = vpop.eup %2069 }
 0x160   : > { %v770_v37 = vmul.f32 %v2068_v30, %v769_v35  ;;  %v776_v38 = vmul.f32 %v2070_v36, %v764_v31  ;;  %vm782_vm5 = vweird.f32 %v2070_v36 }
 0x161   : > { %vm783_vm8 = vmor %vm781_vm6, %vm782_vm5 }
 0x162   : > { %v774_v40 = vsel %vm773_vm4, %v2068_v30, %v770_v37  ;;  %v777_v41 = vmul.f32 %v2070_v36, %v776_v38 }
 0x163   : > { %v785_v42 = vmul.f32 %v774_v40, %v751_v13 }
 0x164   : > { %v778_v44 = vmul.f32 0.5, %v777_v41 }
 0x165   : > { %v790_v45 = vmul.f32 %v2061_v39, %v785_v42 }
 0x166   : > { %v779_v46 = vsub.f32 1.5, %v778_v44 }
 0x167   : > { %v795_v47 = vadd.f32 %v2062_v43, %v790_v45 }
 0x168   : > { %v780_v48 = vmul.f32 %v2070_v36, %v779_v46 }
 0x169   : > { %v797_v49 = vpack.c.bf16 %v795_v47, %v795_v47 }
 0x16a   : > { %v784_v50 = vsel %vm783_vm8, %v2070_v36, %v780_v48 }
 0x16b   : > { %v786_v51 = vmul.f32 %v784_v50, %v752_v18  ;;  %800 = vst.msk [vmem:[#allocation2] sm:$0xf] %vm799_vm7, %v797_v49  ;;  %v812_v55 = vunpack.c.l.b16 %v797_v49 }
 0x16d   : > { %v791_v52 = vmul.f32 %v2061_v39, %v786_v51 }
 0x16f   : > { %v796_v53 = vadd.f32 %v2062_v43, %v791_v52 }
 0x171   : > { %v798_v54 = vpack.c.bf16 %v796_v53, %v796_v53 }
 0x173   : > { %801 = vst.msk [vmem:[#allocation2 + $0x4] sm:$0xf] %vm799_vm7, %v798_v54  ;;  %v813_v56 = vunpack.c.l.b16 %v798_v54 }
 0x175   : > { %v814_v57 = vpack.c.b16 %v813_v56, %v812_v55 }
 0x177   : > { %1761 = vmatmul.msk.bf16.vlgmr.msra.gmra.mxu0 %vm735_vm0, %v814_v57  ;;  %1770 = vmatmul.msk.bf16.vlgmr.msra.gmra.mxu1 %vm735_vm0, %v814_v57 }
 0x1f4   : > { %v839_v60 = vpop.f32.mrf.mxu0  ;;  %v877_v61 = vpop.f32.mrf.mxu1 }
 0x1f5   : > { %v840_v62 = vadd.f32 %v2063_v58, %v839_v60  ;;  %v878_v63 = vadd.f32 %v2064_v59, %v877_v61 }
 0x1f7   : > { %v844_v0 = vpack.c.bf16 %v840_v62, %v840_v62  ;;  %v882_v1 = vpack.c.bf16 %v878_v63, %v878_v63 }
 0x1f9   : > { %846 = vst.msk [vmem:[#allocation3] sm:$0xf] %vm799_vm7, %v844_v0 }
 0x1fa   : > { %884 = vst.msk [vmem:[#allocation4] sm:$0xf] %vm799_vm7, %v882_v1 }
 0x1fc   : > { %v841_v2 = vpop.f32.mrf.mxu0  ;;  %v879_v3 = vpop.f32.mrf.mxu1 }
 0x1fd   : > { %v842_v4 = vadd.f32 %v2063_v58, %v841_v2  ;;  %v880_v5 = vadd.f32 %v2064_v59, %v879_v3 }
 0x1ff   : > { %v845_v6 = vpack.c.bf16 %v842_v4, %v842_v4  ;;  %v883_v7 = vpack.c.bf16 %v880_v5, %v880_v5 }
 0x201   : > { %847 = vst.msk [vmem:[#allocation3 + $0x4] sm:$0xf] %vm799_vm7, %v845_v6 }
 0x202   : > { %885 = vst.msk [vmem:[#allocation4 + $0x4] sm:$0xf] %vm799_vm7, %v883_v7 }
 0x203 PF: > { %s3008_s3 = sld [smem:[#allocation43_spill]]  ;;  %s1771_s15 = sshll.u32 %s2469_s30, 3  ;;  %vm939_vm9 = vcmask 64512   ;;  %vm914_vm10 = vcmask 261120   ;;  %vm959_vm11 = vcmask 130048  }
 0x204   : > { %s889_s24 = sshra.s32 %s1771_s15, 3  ;;  %s2498_s22 = smov 104  }
 0x205   : > { %s1772_s25 = sshll.u32 %s889_s24, 2  ;;  %s2499_s20 = smov 112  }
 0x206   : > { %s892_s6 = scalar_lea.vmem [#allocation2], %s1772_s25  ;;  %s2500_s17 = smov 120  }
 0x207   : > { %v893_v12 = vld [vmem:[%s892_s6] sm:$0xf]  ;;  %s3009_s4 = sld [smem:[#allocation44_spill]]  ;;  %s2975_s2 = smov 8  }
 0x208   : > { %v1876_v9 = vld [vmem:[#allocation3] sm:$0xff]  ;;  %s2502_s18 = smov 16   ;;  %s2503_s27 = smov 24  }
 0x209   : > { %v1875_v8 = vld [vmem:[%s3008_s3 + $0x8] sm:$0xff]  ;;  %v1874_v10 = vld [vmem:[%s3008_s3] sm:$0xff]  ;;  %v944_v11 = vsel %vm939_vm9, %v1876_v9, 0  ;;  %v1877_v49 = vld [vmem:[#allocation4] sm:$0xff]  ;;  %s887_s23 = scalar_lea.vmem %s2761_s9, %s1771_s15  ;;  %s1865_s9 = sshll.u32 %s2473_s0, 3 }
 0x20a   : > { %924 = vmatpush.bf16.msra.mxu0 %v1875_v8  ;;  %953 = vmatpush.bf16.xpose.msra.mxu1 %v944_v11  ;;  %v1882_v13 = vld [vmem:[#allocation3] sm:$0xff]  ;;  %v1879_v55 = vld [vmem:[#allocation4] sm:$0xff]  ;;  %s1528_s15 = sadd.s32 %s2469_s30, %s1865_s9  ;;  %s3012_s6 = sld [smem:[#allocation50_spill]] }
 0x20b   : > { %v1880_v14 = vld [vmem:[#allocation3] sm:$0xff]  ;;  %1201 = vrot.lane.b32.xlu1 %v1882_v13, %s2498_s22  ;;  %1004 = vmatpush.bf16.msra.mxu2 %v1877_v49  ;;  %s1866_s21 = sshll.u32 %s1528_s15, 3  ;;  %s1502_s26 = scalar_lea.sflag [#allocation22], %s2752_s5 }
 0x20c   : > { %v1878_v15 = vld [vmem:[#allocation3] sm:$0xff]  ;;  %1112 = vrot.lane.b32.xlu2 %v1880_v14, %s2499_s20 }
 0x20d   : > { %1023 = vrot.lane.b32.xlu0 %v1878_v15, %s2500_s17  ;;  %v2071_v16 = vld [vmem:[%s3009_s4] ss:$0 sm:$0xff]  ;;  %v1883_v15 = vld [vmem:[#allocation4] sm:$0xff] }
 0x20e   : > { %925 = vmatpush.bf16.msra.mxu0 %v1874_v10 }
 0x210   : > { %s2359_s9 = scalar_lea.hbm %s3012_s6, 128 }
 0x211   : > { %1781 = vmatmul.msk.bf16.vlgmr.msra.gmra.mxu0 %vm914_vm10, %v893_v12 }
 0x266   : > { %v1113_v23 = vpop.permute.xlu2 %1112 }
 0x267   : > { %v1118_v24 = vsel %vm939_vm9, %v1113_v23, 0 }
 0x268   : > { %1127 = vmatpush.bf16.xpose.msrb.mxu0 %v1118_v24 }
 0x27d   : > { %v1202_v27 = vpop.permute.xlu1 %1201 }
 0x27e   : > { %v1207_v28 = vsel %vm939_vm9, %v1202_v27, 0 }
 0x27f   : > { %v1024_v25 = vpop.permute.xlu0 %1023 }
 0x280   : > { %v1029_v26 = vsel %vm939_vm9, %v1024_v25, 0 }
 0x281   : > { %1038 = vmatpush.bf16.xpose.msra.mxu3 %v1029_v26 }
 0x289   : > { %1216 = vmatpush.bf16.xpose.msrb.mxu3 %v1207_v28 }
 0x28e   : > { %v927_v17 = vpop.f32.mrf.mxu0 }
 0x28f   : > { %v928_v18 = vadd.f32 %v2071_v16, %v927_v17  ;;  %v1881_v16 = vld [vmem:[#allocation4] sm:$0xff] }
 0x291   : > { %v931_v19 = vpack.c.bf16 %v928_v18, %v928_v18 }
 0x293   : > { %v1014_v20 = vunpack.c.l.b16 %v931_v19  ;;  %1786 = vmatmul.msk.bf16.vlgmr.msra.gmra.mxu1 %vm939_vm9, %v931_v19 }
 0x295   : > { %v1015_v21 = vpack.c.b16 %v1014_v20, %v1014_v20 }
 0x296   : > { %v929_v22 = vpop.f32.mrf.mxu0 }
 0x297   : > { %1105 = vrot.lane.b32.xlu2 %v1015_v21, %s2499_s20  ;;  %1194 = vrot.lane.b32.xlu1 %v1015_v21, %s2498_s22 }
 0x298   : > { %1016 = vrot.lane.b32.xlu0 %v1015_v21, %s2500_s17 }
 0x2f1   : > { %v1106_v29 = vpop.permute.xlu2 %1105 }
 0x2f2   : > { %1807 = vmatmul.msk.bf16.vlgmr.msrb.gmra.mxu0 %vm939_vm9, %v1106_v29 }
 0x309   : > { %v1195_v34 = vpop.permute.xlu1 %1194 }
 0x30a   : > { %v1017_v30 = vpop.permute.xlu0 %1016 }
 0x30b   : > { %1796 = vmatmul.msk.bf16.vlgmr.msra.gmra.mxu3 %vm939_vm9, %v1017_v30 }
 0x310   : > { %v955_v31 = vpop.f32.mrf.mxu1 }
 0x311   : > { %v960_v32 = vsel %vm959_vm11, %v955_v31, -inf }
 0x312   : > { %961 = vmax.xlane.f32.xlu0 %v960_v32 }
 0x318   : > { %v957_v33 = vpop.f32.mrf.mxu1 }
 0x31b   : > { %1818 = vmatmul.msk.bf16.vlgmr.msrb.gmra.mxu3 %vm939_vm9, %v1195_v34 }
 0x36f   : > { %v1129_v35 = vpop.f32.mrf.mxu0 }
 0x370   : > { %v1133_v48 = vsel %vm959_vm11, %v1129_v35, -inf }
 0x377   : > { %v1131_v36 = vpop.f32.mrf.mxu0 }
 0x385   : > { %v962_v37 = vpop.xlane.xlu0 %961 }
 0x386   : > { %v963_v38 = vsub.f32 %v955_v31, %v962_v37 }
 0x388   : > { %v964_v39 = vmul.f32 1.442695, %v963_v38 }
 0x38a   : > { %2077 = vpow2.f32 %v964_v39 }
 0x38e   : > { %v1040_v40 = vpop.f32.mrf.mxu3 }
 0x38f   : > { %v1044_v41 = vsel %vm959_vm11, %v1040_v40, -inf }
 0x390   : > { %v2078_v42 = vpop.eup %2077  ;;  %1045 = vmax.xlane.f32.xlu1 %v1044_v41 }
 0x391   : > { %v966_v43 = vsel %vm959_vm11, %v2078_v42, 0.0 }
 0x392   : > { %967 = vadd.xlane.f32.xlu0 %v966_v43 }
 0x396   : > { %v1042_v44 = vpop.f32.mrf.mxu3 }
 0x39e   : > { %v1218_v45 = vpop.f32.mrf.mxu3 }
 0x39f   : > { %v1222_v46 = vsel %vm959_vm11, %v1218_v45, -inf }
 0x3a0   : > { %1223 = vmax.xlane.f32.xlu2 %v1222_v46 }
 0x3a6   : > { %v1220_v47 = vpop.f32.mrf.mxu3  ;;  %1078 = vrot.lane.b32.xlu0 %v1879_v55, %s2500_s17  ;;  %s1531_s17 = sshll.u32 %s2765_s19, 4  ;;  %s1532_s17 = int_to_ptr.vmem [resolvable:$true] %s1531_s17 }
 0x3a8   : > { %1134 = vmax.xlane.f32.xlu2 %v1133_v48 }
 0x403   : > { %v1046_v3 = vpop.xlane.xlu1 %1045 }
 0x404   : > { %v1047_v7 = vsub.f32 %v1040_v40, %v1046_v3  ;;  %v1885_v3 = vld [vmem:[#allocation12 + $0x8] sm:$0xff] }
 0x405   : > { %v968_v50 = vpop.xlane.xlu0 %967  ;;  %1312 = vmatpush.bf16.msra.mxu0 %v1885_v3 }
 0x406   : > { %2079 = vrcp.f32 %v968_v50  ;;  %v980_v54 = vand.u32 2147483648, %v968_v50  ;;  %v978_v57 = vand.u32 2147483647, %v968_v50  ;;  %vm974_vm13 = vweird.f32 %v968_v50 }
 0x407   : > { %v1048_v10 = vmul.f32 1.442695, %v1047_v7 }
 0x408   : > { %v981_v60 = vor.u32 1.1754944e-38, %v980_v54  ;;  %vm979_vm15 = vcmp.eq.f32.partialorder %v978_v57, 8.507059e+37 }
 0x40c   : > { %v2080_v51 = vpop.eup %2079 }
 0x40d   : > { %v970_v52 = vmul.f32 %v2080_v51, %v968_v50  ;;  %vm975_vm12 = vweird.f32 %v2080_v51 }
 0x40e   : > { %vm976_vm14 = vmor %vm974_vm13, %vm975_vm12 }
 0x40f   : > { %v971_v53 = vsub.f32 1.0, %v970_v52 }
 0x411   : > { %v972_v56 = vmul.f32 %v2080_v51, %v971_v53 }
 0x413   : > { %v973_v58 = vadd.f32 %v2080_v51, %v972_v56  ;;  %v1224_v59 = vpop.xlane.xlu2 %1223 }
 0x414   : > { %v1225_v61 = vsub.f32 %v1218_v45, %v1224_v59 }
 0x415   : > { %v977_v62 = vsel %vm976_vm14, %v2080_v51, %v973_v58  ;;  %vm1190_vm14 = vcmask 195712  }
 0x416   : > { %v1226_v63 = vmul.f32 1.442695, %v1225_v61  ;;  %v982_v0 = vsel %vm979_vm15, %v981_v60, %v977_v62  ;;  %vm1279_vm15 = vcmask 261312  }
 0x417   : > { %v983_v1 = vmul.f32 %v2078_v42, %v982_v0 }
 0x418   : > { %2081 = vpow2.f32 %v1226_v63  ;;  %v1079_v18 = vpop.permute.xlu0 %1078 }
 0x419   : > { %984 = vst.msk [vmem:[%s2765_s19] sm:$0xff] %vm959_vm11, %v983_v1  ;;  %v987_v2 = vpack.c.bf16 %v983_v1, %v983_v1  ;;  %1091 = vmatpush.bf16.msrb.mxu2 %v1079_v18 }
 0x41b   : > { %v1135_v4 = vpop.xlane.xlu2 %1134  ;;  %1791 = vmatmul.msk.bf16.vlgmr.msra.gmra.mxu2 %vm959_vm11, %v987_v2 }
 0x41c   : > { %v1136_v5 = vsub.f32 %v1129_v35, %v1135_v4  ;;  %v1884_v4 = vld [vmem:[#allocation12] sm:$0xff] }
 0x41d   : > { %1313 = vmatpush.bf16.msra.mxu0 %v1884_v4 }
 0x41e   : > { %v2082_v6 = vpop.eup %2081  ;;  %v1137_v8 = vmul.f32 1.442695, %v1136_v5 }
 0x41f   : > { %v1228_v9 = vsel %vm959_vm11, %v2082_v6, 0.0 }
 0x420   : > { %2083 = vpow2.f32 %v1137_v8  ;;  %1229 = vadd.xlane.f32.xlu2 %v1228_v9 }
 0x421   : > { %2085 = vpow2.f32 %v1048_v10  ;;  %v2072_v10 = vld [vmem:[#allocation14] ss:$0 sm:$0xff] }
 0x426   : > { %v2084_v11 = vpop.eup %2083 }
 0x427   : > { %v1139_v12 = vsel %vm959_vm11, %v2084_v11, 0.0  ;;  %v2829_v13 = vpop.eup %2085 }
 0x428   : > { %1140 = vadd.xlane.f32.xlu1 %v1139_v12  ;;  %v1050_v14 = vsel %vm959_vm11, %v2829_v13, 0.0 }
 0x430   : > { %1051 = vadd.xlane.f32.xlu1 %v1050_v14 }
 0x438   : > { %1256 = vrot.lane.b32.xlu2 %v1883_v15, %s2498_s22  ;;  %s3010_s22 = sld [smem:[#allocation48_spill]] }
 0x43e   : > { %v1888_v4 = vld [vmem:[%s3010_s22] sm:$0xff] }
 0x449   : > { %1167 = vrot.lane.b32.xlu1 %v1881_v16, %s2499_s20  ;;  %s1530_s20 = scalar_lea.hbm %s3012_s6, %s1866_s21 }
 0x44a   : > { %s1533_s29 = sshll.u32 %s1530_s20, 4  ;;  %s1534_s29 = int_to_ptr.hbm [resolvable:$true] %s1533_s29 }
 0x493   : > { %v1230_v17 = vpop.xlane.xlu2 %1229 }
 0x494   : > { %2087 = vrcp.f32 %v1230_v17  ;;  %v1242_v23 = vand.u32 2147483648, %v1230_v17  ;;  %v1240_v26 = vand.u32 2147483647, %v1230_v17  ;;  %vm1236_vm1 = vweird.f32 %v1230_v17 }
 0x496   : > { %v1243_v30 = vor.u32 1.1754944e-38, %v1242_v23  ;;  %vm1241_vm3 = vcmp.eq.f32.partialorder %v1240_v26, 8.507059e+37 }
 0x49a   : > { %v2088_v19 = vpop.eup %2087 }
 0x49b   : > { %v1232_v20 = vmul.f32 %v2088_v19, %v1230_v17  ;;  %v1141_v21 = vpop.xlane.xlu1 %1140  ;;  %vm1237_vm0 = vweird.f32 %v2088_v19  ;;  %v1257_v27 = vpop.permute.xlu2 %1256  ;;  %v2504_v17 = vmov 32.0  }
 0x49c   : > { %2089 = vrcp.f32 %v1141_v21  ;;  %1269 = vmatpush.bf16.msra.mxu2 %v1257_v27  ;;  %vm1238_vm2 = vmor %vm1236_vm1, %vm1237_vm0  ;;  %v1153_v37 = vand.u32 2147483648, %v1141_v21  ;;  %v1151_v40 = vand.u32 2147483647, %v1141_v21  ;;  %vm1147_vm5 = vweird.f32 %v1141_v21 }
 0x49d   : > { %v1233_v22 = vsub.f32 1.0, %v1232_v20 }
 0x49e   : > { %v1006_v24 = vpop.f32.mrf.mxu2  ;;  %v1154_v43 = vor.u32 1.1754944e-38, %v1153_v37  ;;  %vm1152_vm7 = vcmp.eq.f32.partialorder %v1151_v40, 8.507059e+37  ;;  %v2073_v40 = vld [vmem:[%s2953_s11] ss:$0 sm:$0xff] }
 0x49f   : > { %v1234_v25 = vmul.f32 %v2088_v19, %v1233_v22  ;;  %1010 = vst.msk [vmem:[#allocation5] sm:$0xff] %vm939_vm9, %v1006_v24 }
 0x4a1   : > { %v1235_v28 = vadd.f32 %v2088_v19, %v1234_v25 }
 0x4a2   : > { %v2090_v29 = vpop.eup %2089 }
 0x4a3   : > { %v1239_v31 = vsel %vm1238_vm2, %v2088_v19, %v1235_v28  ;;  %v1143_v32 = vmul.f32 %v2090_v29, %v1141_v21  ;;  %v1052_v33 = vpop.xlane.xlu1 %1051  ;;  %vm1148_vm4 = vweird.f32 %v2090_v29 }
 0x4a4   : > { %v1244_v34 = vsel %vm1241_vm3, %v1243_v30, %v1239_v31  ;;  %2091 = vrcp.f32 %v1052_v33  ;;  %vm1149_vm6 = vmor %vm1147_vm5, %vm1148_vm4  ;;  %v1064_v49 = vand.u32 2147483648, %v1052_v33  ;;  %v1062_v51 = vand.u32 2147483647, %v1052_v33  ;;  %v1886_v30 = vld [vmem:[#allocation15] sm:$0xff] }
 0x4a5   : > { %v1245_v35 = vmul.f32 %v2082_v6, %v1244_v34  ;;  %v1144_v36 = vsub.f32 1.0, %v1143_v32  ;;  %vm1058_vm9 = vweird.f32 %v1052_v33  ;;  %2093 = vrcp.f32 %v2504_v17 }
 0x4a6   : > { %v1008_v38 = vpop.f32.mrf.mxu2  ;;  %v1065_v53 = vor.u32 1.1754944e-38, %v1064_v49  ;;  %vm1063_vm13 = vcmp.eq.f32.partialorder %v1062_v51, 8.507059e+37 }
 0x4a7   : > { %1819 = vst.msk [vmem:[%s2765_s19 + $0x18] sm:$0xff] %vm959_vm11, %v1245_v35  ;;  %v1145_v39 = vmul.f32 %v2090_v29, %v1144_v36  ;;  %v1250_v60 = vpack.c.bf16 %v1245_v35, %v1245_v35 }
 0x4a9   : > { %v1146_v41 = vadd.f32 %v2090_v29, %v1145_v39 }
 0x4aa   : > { %v2092_v42 = vpop.eup %2091 }
 0x4ab   : > { %v1150_v44 = vsel %vm1149_vm6, %v2090_v29, %v1146_v41  ;;  %v1054_v45 = vmul.f32 %v2092_v42, %v1052_v33  ;;  %vm1059_vm8 = vweird.f32 %v2092_v42  ;;  %v2094_v18 = vpop.eup %2093  ;;  %v1887_v29 = vld [vmem:[#allocation15 + $0x8] sm:$0xff] }
 0x4ac   : > { %v1155_v46 = vsel %vm1152_vm7, %v1154_v43, %v1150_v44  ;;  %vm1060_vm12 = vmor %vm1058_vm9, %vm1059_vm8  ;;  %v1326_v19 = vmul.f32 32.0, %v2094_v18  ;;  %vm1330_vm0 = vweird.f32 %v2094_v18  ;;  %v2074_v43 = vld [vmem:[%s2954_s12] ss:$0 sm:$0xff]  ;;  %vm1477_vm8 = vcmask 523264  }
 0x4ad   : > { %v1055_v47 = vsub.f32 1.0, %v1054_v45  ;;  %v1156_v48 = vmul.f32 %v2084_v11, %v1155_v46  ;;  %v888_v11 = vld [vmem:[%s887_s23] sm:$0xff] }
 0x4ae   : > { %v1327_v20 = vsub.f32 1.0, %v1326_v19 }
 0x4af   : > { %v1056_v50 = vmul.f32 %v2092_v42, %v1055_v47  ;;  %1808 = vst.msk [vmem:[%s2765_s19 + $0x10] sm:$0xff] %vm959_vm11, %v1156_v48  ;;  %v1161_v59 = vpack.c.bf16 %v1156_v48, %v1156_v48  ;;  %v2075_v47 = vld [vmem:[#allocation17] ss:$0 sm:$0xff] }
 0x4b0   : > { %v1328_v21 = vmul.f32 %v2094_v18, %v1327_v20 }
 0x4b1   : > { %v1057_v52 = vadd.f32 %v2092_v42, %v1056_v50 }
 0x4b2   : > { %v1329_v22 = vadd.f32 %v2094_v18, %v1328_v21 }
 0x4b3   : > { %v1061_v54 = vsel %vm1060_vm12, %v2092_v42, %v1057_v52 }
 0x4b4   : > { %v1066_v55 = vsel %vm1063_vm13, %v1065_v53, %v1061_v54  ;;  %v1331_v23 = vsel %vm1330_vm0, %v2094_v18, %v1329_v22  ;;  %v1891_v54 = vld [vmem:[%s3010_s22 + $0x18] sm:$0xff] }
 0x4b5   : > { %v1067_v56 = vmul.f32 %v2829_v13, %v1066_v55  ;;  %1485 = vmatpush.bf16.msra.mxu3 %v1891_v54 }
 0x4b7   : > { %1797 = vst.msk [vmem:[%s2765_s19 + $0x8] sm:$0xff] %vm959_vm11, %v1067_v56  ;;  %v1072_v57 = vpack.c.bf16 %v1067_v56, %v1067_v56 }
 0x4b9   : > { %1802 = vmatmul.msk.bf16.vlgmr.msrb.gmra.mxu2 %vm959_vm11, %v1072_v57 }
 0x4bb   : > { %v1168_v58 = vpop.permute.xlu1 %1167 }
 0x4bc   : > { %1180 = vmatpush.bf16.msrb.mxu1 %v1168_v58 }
 0x4bf   : > { %1813 = vmatmul.msk.bf16.vlgmr.msrb.gmra.mxu1 %vm959_vm11, %v1161_v59  ;;  %v1890_v59 = vld [vmem:[%s3010_s22 + $0x10] sm:$0xff] }
 0x4c0   : > { %1389 = vmatpush.bf16.msra.mxu1 %v1887_v29  ;;  %1486 = vmatpush.bf16.msra.mxu3 %v1890_v59 }
 0x4c4   : > { %1390 = vmatpush.bf16.msra.mxu1 %v1886_v30 }
 0x4c9   : > { %1824 = vmatmul.msk.bf16.vlgmr.msra.gmra.mxu2 %vm959_vm11, %v1250_v60  ;;  %vm1101_vm11 = vcmask 130112  }
 0x53c   : > { %v1093_v61 = vpop.f32.mrf.mxu2  ;;  %v1182_v62 = vpop.f32.mrf.mxu1 }
 0x53d   : > { %1098 = vrot.lane.b32.xlu0 %v1093_v61, %s2975_s2 }
 0x544   : > { %v1095_v63 = vpop.f32.mrf.mxu2  ;;  %v1184_v0 = vpop.f32.mrf.mxu1 }
 0x545   : > { %1187 = vrot.lane.b32.xlu0 %v1182_v62, %s2502_s18  ;;  %v1889_v0 = vld [vmem:[%s3010_s22 + $0x8] sm:$0xff]  ;;  %s2353_s18 = sshra.s32 %s1534_s29, 4  ;;  %s2354_s18 = int_to_ptr.hbm [resolvable:$true] %s2353_s18 }
 0x546   : > { %1487 = vmatpush.bf16.msra.mxu3 %v1889_v0  ;;  %p2360_p7 = scmp.lt.s32.totalorder %s2354_s18, %s3012_s6 }
 0x54a   : > { %1488 = vmatpush.bf16.msra.mxu3 %v1888_v4 }
 0x54c   : > { %v1271_v1 = vpop.f32.mrf.mxu2 }
 0x54d   : > { %1276 = vrot.lane.b32.xlu2 %v1271_v1, %s2503_s27  ;;  %s2355_s27 = scalar_lea.hbm %s2354_s18, 32 }
 0x54e   : > { %p2356_p4 = scmp.ne.s32.totalorder %s2354_s18, %s2355_s27  ;;  %p2361_p9 = scmp.lt.s32.totalorder %s2359_s9, %s2355_s27 }
 0x550   : > { %p2357_p5 = pnand %p2356_p4, %p2654_p3  ;;  %p2362_p10 = por %p2361_p9, %p2360_p7 }
 0x552   : > { %p2358_p6 = pneg %p2357_p5 }
 0x554   : > { %v1273_v2 = vpop.f32.mrf.mxu2  ;;  %p2363_p11 = pnand %p2362_p10, %p2358_p6 }
 0x5a7   : > { %v1277_v7 = vpop.permute.xlu2 %1276 }
 0x5af   : > { %v1099_v5 = vpop.permute.xlu0 %1098 }
 0x5b0   : > { %1102 = vst.msk [vmem:[#allocation5] sm:$0xff] %vm1101_vm11, %v1099_v5 }
 0x5b7   : > { %v1188_v6 = vpop.permute.xlu0 %1187 }
 0x5b8   : > { %1191 = vst.msk [vmem:[#allocation5] sm:$0xff] %vm1190_vm14, %v1188_v6 }
 0x5b9   : > { %1280 = vst.msk [vmem:[#allocation5] sm:$0xff] %vm1279_vm15, %v1277_v7 }
 0x5c0   : > { %v1281_v8 = vld [vmem:[#allocation5] sm:$0xff] }
 0x5c1   : > { %v1282_v9 = vpack.c.bf16 %v1281_v8, %v1281_v8 }
 0x5c3   : > { %1833 = vmatmul.msk.bf16.vlgmr.msra.gmra.mxu0 %vm914_vm10, %v1282_v9 }
 0x640   : > { %v1315_v12 = vpop.f32.mrf.mxu0 }
 0x641   : > { %v1316_v13 = vadd.f32 %v2072_v10, %v1315_v12 }
 0x643   : > { %v2851_v14 = vadd.f32 %v1316_v13, %v888_v11 }
 0x645   : > { %v1322_v15 = vsel %vm914_vm10, %v2851_v14, 0.0 }
 0x646   : > { %1323 = vadd.xlane.f32.xlu1 %v1322_v15 }
 0x648   : > { %v1317_v16 = vpop.f32.mrf.mxu0 }
 0x6b9   : > { %v1324_v24 = vpop.xlane.xlu1 %1323 }
 0x6ba   : > { %v1332_v25 = vmul.f32 %v1331_v23, %v1324_v24 }
 0x6bc   : > { %v1333_v26 = vsub.f32 %v2851_v14, %v1332_v25 }
 0x6be   : > { %v1334_v27 = vmul.f32 %v1333_v26, %v1333_v26 }
 0x6c0   : > { %v1335_v28 = vsel %vm914_vm10, %v1334_v27, 0.0 }
 0x6c1   : > { %1336 = vadd.xlane.f32.xlu0 %v1335_v28 }
 0x734   : > { %v1337_v31 = vpop.xlane.xlu0 %1336 }
 0x735   : > { %v1338_v32 = vmul.f32 %v1337_v31, %v1331_v23 }
 0x737   : > { %v1339_v33 = vadd.f32 1e-06, %v1338_v32 }
 0x739   : > { %2095 = vrsqrt.f32 %v1339_v33  ;;  %vm1346_vm2 = vweird.f32 %v1339_v33 }
 0x73f   : > { %v2096_v34 = vpop.eup %2095 }
 0x740   : > { %v1341_v35 = vmul.f32 %v2096_v34, %v1339_v33  ;;  %vm1347_vm1 = vweird.f32 %v2096_v34 }
 0x741   : > { %vm1348_vm3 = vmor %vm1346_vm2, %vm1347_vm1 }
 0x742   : > { %v1342_v36 = vmul.f32 %v2096_v34, %v1341_v35 }
 0x744   : > { %v1343_v37 = vmul.f32 0.5, %v1342_v36 }
 0x746   : > { %v1344_v38 = vsub.f32 1.5, %v1343_v37 }
 0x748   : > { %v1345_v39 = vmul.f32 %v2096_v34, %v1344_v38 }
 0x74a   : > { %v1349_v41 = vsel %vm1348_vm3, %v2096_v34, %v1345_v39 }
 0x74b   : > { %v1350_v42 = vmul.f32 %v1349_v41, %v1333_v26 }
 0x74d   : > { %v1354_v44 = vmul.f32 %v2073_v40, %v1350_v42 }
 0x74f   : > { %v1358_v45 = vadd.f32 %v2074_v43, %v1354_v44 }
 0x751   : > { %v1359_v46 = vpack.c.bf16 %v1358_v45, %v1358_v45 }
 0x753   : > { %1842 = vmatmul.msk.bf16.vlgmr.msra.gmra.mxu1 %vm914_vm10, %v1359_v46 }
 0x7d0   : > { %v1392_v48 = vpop.f32.mrf.mxu1 }
 0x7d1   : > { %v1393_v49 = vadd.f32 %v2075_v47, %v1392_v48 }
 0x7d3   : > { %v1397_v50 = vmul.f32 0.70710677, %v1393_v49  ;;  %v1396_v28 = vmul.f32 0.5, %v1393_v49 }
 0x7d5   : > { %v1398_v51 = vmul.f32 %v1397_v50, %v1397_v50 }
 0x7d7   : > { %v1399_v52 = vmin.f32 %v1398_v51, 16.0 }
 0x7d8   : > { %v1394_v53 = vpop.f32.mrf.mxu1 }
 0x7d9   : > { %v1400_v55 = vmul.f32 2.1237322e-06, %v1399_v52  ;;  %v1411_v56 = vmul.f32 3.8918573e-05, %v1399_v52 }
 0x7db   : > { %v1401_v57 = vadd.f32 0.00028619796, %v1400_v55  ;;  %v1412_v58 = vadd.f32 0.001143296, %v1411_v56 }
 0x7dd   : > { %v1402_v60 = vmul.f32 %v1401_v57, %v1399_v52  ;;  %v1413_v61 = vmul.f32 %v1412_v58, %v1399_v52 }
 0x7df   : > { %v1414_v62 = vadd.f32 0.014752088, %v1413_v61  ;;  %v1403_v63 = vadd.f32 0.0036580483, %v1402_v60 }
 0x7e1   : > { %v1415_v1 = vmul.f32 %v1414_v62, %v1399_v52  ;;  %v1404_v3 = vmul.f32 %v1403_v63, %v1399_v52 }
 0x7e3   : > { %v1416_v2 = vadd.f32 0.112945676, %v1415_v1  ;;  %v1405_v7 = vadd.f32 0.05243302, %v1404_v3 }
 0x7e5   : > { %v1417_v5 = vmul.f32 %v1416_v2, %v1399_v52  ;;  %v1406_v10 = vmul.f32 %v1405_v7, %v1399_v52 }
 0x7e7   : > { %v1418_v6 = vadd.f32 0.4994258, %v1417_v5  ;;  %v1407_v11 = vadd.f32 0.18741608, %v1406_v10 }
 0x7e9   : > { %v1419_v8 = vmul.f32 %v1418_v6, %v1399_v52  ;;  %v1408_v13 = vmul.f32 %v1407_v11, %v1399_v52 }
 0x7eb   : > { %v1420_v9 = vadd.f32 1.0, %v1419_v8  ;;  %v1409_v18 = vadd.f32 1.1283791, %v1408_v13 }
 0x7ed   : > { %2097 = vrcp.f32 %v1420_v9  ;;  %v1432_v17 = vand.u32 2147483648, %v1420_v9  ;;  %v1430_v20 = vand.u32 2147483647, %v1420_v9  ;;  %vm1426_vm5 = vweird.f32 %v1420_v9 }
 0x7ee   : > { %v1410_v23 = vmul.f32 %v1409_v18, %v1397_v50 }
 0x7ef   : > { %v1433_v22 = vor.u32 1.1754944e-38, %v1432_v17  ;;  %vm1431_vm7 = vcmp.eq.f32.partialorder %v1430_v20, 8.507059e+37 }
 0x7f3   : > { %v2098_v12 = vpop.eup %2097 }
 0x7f4   : > { %v1422_v15 = vmul.f32 %v2098_v12, %v1420_v9  ;;  %vm1427_vm4 = vweird.f32 %v2098_v12 }
 0x7f5   : > { %vm1428_vm6 = vmor %vm1426_vm5, %vm1427_vm4 }
 0x7f6   : > { %v1423_v16 = vsub.f32 1.0, %v1422_v15 }
 0x7f8   : > { %v1424_v19 = vmul.f32 %v2098_v12, %v1423_v16 }
 0x7fa   : > { %v1425_v21 = vadd.f32 %v2098_v12, %v1424_v19 }
 0x7fc   : > { %v1429_v24 = vsel %vm1428_vm6, %v2098_v12, %v1425_v21 }
 0x7fd   : > { %v1434_v25 = vsel %vm1431_vm7, %v1433_v22, %v1429_v24 }
 0x7fe   : > { %v1435_v26 = vmul.f32 %v1434_v25, %v1410_v23 }
 0x800   : > { %v1843_v27 = vclamps-f32 %v1435_v26, 1.0 }
 0x802   : > { %v1438_v29 = vadd.f32 1.0, %v1843_v27 }
 0x804   : > { %v1439_v30 = vmul.f32 %v1438_v29, %v1396_v28 }
 0x806   : > { %v1440_v31 = vpack.c.bf16 %v1439_v30, %v1439_v30 }
 0x808   : > { %1860 = vmatmul.msk.bf16.vlgmr.msra.gmra.mxu3 %vm1477_vm8, %v1440_v31 }
 0x809   : > { %2366 = shalt.err (!%p2363_p11)
}
 0x80a   : > { %s2505_s19 = smov 128   ;;  %s2506_s21 = smov 256   ;;  %v2076_v32 = vld [vmem:[#allocation18] ss:$0 sm:$0xff] }
 0x80b   : > { %s3013_s24 = smov 8   ;;  %s1863_s3 = sshll.u32 %s2473_s0, 1 }
 0x80c   : > { %1925 = dma.vmem_to_hbm [thread:$0]  (%p2654_p3), %s1532_s17, 512, %s1534_s29, %s1502_s26, %s2505_s19, %s2506_s21, %s3013_s24  }
 0x80d   : > { %s1512_s2 = sadd.s32 %s2469_s30, %s1863_s3  ;;  %s3014_s18 = sld [smem:[#allocation49_spill]] }
 0x80e   : > { %s1864_s25 = sshll.u32 %s1512_s2, 3  ;;  %s1516_s9 = sshll.u32 %s2763_s1, 4  ;;  %s1517_s9 = int_to_ptr.vmem [resolvable:$true] %s1516_s9 }
 0x80f   : > { %s1497_s17 = scalar_lea.sflag [#allocation8], %s2752_s5 }
 0x813   : > { %s1514_s27 = scalar_lea.hbm %s3014_s18, %s1864_s25  ;;  %s2387_s19 = scalar_lea.hbm %s3014_s18, 32 }
 0x814   : > { %s1518_s15 = sshll.u32 %s1514_s27, 4  ;;  %s1519_s15 = int_to_ptr.hbm [resolvable:$true] %s1518_s15 }
 0x815   : > { %s2381_s0 = sshra.s32 %s1519_s15, 4  ;;  %s2382_s0 = int_to_ptr.hbm [resolvable:$true] %s2381_s0 }
 0x816   : > { %s2383_s30 = scalar_lea.hbm %s2382_s0, 8  ;;  %p2388_p1 = scmp.lt.s32.totalorder %s2382_s0, %s3014_s18 }
 0x817   : > { %p2384_p12 = scmp.ne.s32.totalorder %s2382_s0, %s2383_s30  ;;  %p2389_p2 = scmp.lt.s32.totalorder %s2387_s19, %s2383_s30 }
 0x819   : > { %p2385_p13 = pnand %p2384_p12, %p2654_p3  ;;  %p2390_p4 = por %p2389_p2, %p2388_p1 }
 0x81b   : > { %p2386_p0 = pneg %p2385_p13 }
 0x81d   : > { %p2391_p5 = pnand %p2390_p4, %p2386_p0 }
 0x88b   : > { %v1490_v33 = vpop.f32.mrf.mxu3 }
 0x88c   : > { %v1491_v34 = vadd.f32 %v2076_v32, %v1490_v33 }
 0x88e   : > { %v1494_v35 = vadd.f32 %v1491_v34, %v2851_v14 }
 0x890   : > { %1495 = vst.msk [vmem:[%s2763_s1] sm:$0xff] %vm914_vm10, %v1494_v35 }
 0x891   : > { %2394 = shalt.err (!%p2391_p5)
}
 0x892   : > { %1924 = dma.vmem_to_hbm [thread:$0]  (%p2654_p3), %s1517_s9, 128, %s1519_s15, %s1497_s17  }
 0x893   : > { %v1492_v14 = vpop.f32.mrf.mxu3 }
 0x894 PF: > { %s3015_s5 = sld [smem:[#allocation34_spill]] }
 0x895   : > { %s3016_s1 = sld [smem:[#allocation30_spill]] }
 0x89a   : > { %p1976_p6 = scmp.ge.s32.totalorder %s3015_s5, 2 }
 0x89b   : > { %s1548_s2 = sand.u32 1, %s3016_s1  }
 0x89c   : > { %p1954_p7 = pnand %p1976_p6, %p2663_p8  ;;  %s1549_s25 = scalar_lea.sflag [#allocation8], %s1548_s2 }
 0x89e   : > { %p1955_p9 = pneg %p1954_p7 }
 0x8a0   : > { %2448 = dma.done.wait (%p1955_p9), %s1549_s25, 128  }
 0x8a1   : > { %2450 = vsyncadd (%p1955_p9), %s1549_s25, 4294967168  ;;  %s1559_s4 = scalar_lea.sflag [#allocation22], %s1548_s2 }
 0x8a2   : > { %2452 = dma.done.wait (%p1955_p9), %s1559_s4, 512  }
 0x8a3   : > { %2454 = vsyncadd (%p1955_p9), %s1559_s4, 4294966784  ;;  %s40_s20 = sadd.s32 1, %s3015_s5   ;;  %s3018_s23 = sld [smem:[#allocation31_spill]] }
 0x8a4   : > { %p37_p10 = scmp.ge.s32.totalorder %s40_s20, 6   ;;  %s3019_s29 = sld [smem:[#allocation39_spill]] }
 0x8a5   : > { %s3020_s30 = sld [smem:[#allocation32_spill]]  ;;  %s3024_s27 = smov %s2461_s28 }
 0x8a6   : > { %s3021_s0 = sld [smem:[#allocation33_spill]]  ;;  %39 = sbr.rel (!%p37_p10) target bundleno = 24 (0x18), region = 182 }
 0x8a7   : > { %s3022_s19 = sld [smem:[#allocation35_spill]] }
 0x8a8   : > { %s3023_s1 = sld [smem:[#allocation37_spill]] }
 0x8a9   : > { %s3025_s28 = smov %s3018_s23 }
 0x8ab   :  { %1565 = vsyncpa [#allocation7], 1 }
 0x8ac   :  { %1567 = vsyncpa [#allocation7 + $0x1], 1 }
 0x8ad   :  { %1568 = vsyncpa [#allocation10], 1 }
 0x8ae   :  { %1569 = vsyncpa [#allocation13], 1 }
 0x8af   :  { %1570 = vsyncpa [#allocation16], 1 }
 0x8b0   :  { %1571 = vsyncpa [#allocation19], 1 }
 0x8b1   :  { %1572 = vsyncpa [#allocation8], 1 }
 0x8b2   :  { %1574 = vsyncpa [#allocation8 + $0x1], 1 }
 0x8b3   :  { %1575 = vsyncpa [#allocation22], 1 }
 0x8b4   :  { %1577 = vsyncpa [#allocation22 + $0x1], 1 }

</bundles_post_ra>
